<compile_context>
chip_gen: v7x
topology: tpu7x:2x2x1
jax: 0.10.0
libtpu: 0.0.40
codegen_flags: <defaults>
</compile_context>

<pallas_src>
import math
import jax
import jax.numpy as jnp
from jax.experimental import pallas as pl
from jax.experimental.pallas import tpu as pltpu

# ----- problem sizes (small, consistent with the module) -----
B = 2          # batch
S = 8          # sequence length
D = 32         # hidden_dim
NH = 4         # num_heads
HD = D // NH   # head_dim
F = 64         # ff_dim
G = B * NH     # folded (batch, head) dim
EPS = 1e-5


def transformer_layer_kernel(
    x_ref,          # (B*S, D)
    wq_ref,         # (G, D, HD)  per-(batch,head) q projection, scale folded in
    bq_ref,         # (G, 1, HD)
    wk_ref,         # (G, D, HD)
    bk_ref,         # (G, 1, HD)
    wv_ref,         # (G, D, HD)
    bv_ref,         # (G, 1, HD)
    wo_ref,         # (G, HD, D)  per-head slice of out_proj.weight.T
    bo_ref,         # (1, D)
    w1_ref,         # (D, F)      ff Linear1 weight, pre-transposed
    b1_ref,         # (1, F)
    w2_ref,         # (F, D)      ff Linear2 weight, pre-transposed
    b2_ref,         # (1, D)
    g1_ref, beta1_ref,   # (1, D) LayerNorm1 gamma/beta
    g2_ref, beta2_ref,   # (1, D) LayerNorm2 gamma/beta
    o_ref,          # (B*S, D)
):
    x = x_ref[...]                                            # (B*S, D)

    # ---- multi-head self attention: all (batch, head) pairs batched ----
    xg = jnp.broadcast_to(
        x.reshape(B, S, D)[:, None, :, :], (B, NH, S, D)).reshape(G, S, D)

    q = jnp.einsum('gsd,gdf->gsf', xg, wq_ref[...],
                   preferred_element_type=jnp.float32) + bq_ref[...]   # (G,S,HD)
    k = jnp.einsum('gsd,gdf->gsf', xg, wk_ref[...],
                   preferred_element_type=jnp.float32) + bk_ref[...]
    v = jnp.einsum('gsd,gdf->gsf', xg, wv_ref[...],
                   preferred_element_type=jnp.float32) + bv_ref[...]

    s = jnp.einsum('gqd,gkd->gqk', q, k,
                   preferred_element_type=jnp.float32)                  # (G,S,S)
    s = s - jnp.max(s, axis=-1, keepdims=True)
    p = jnp.exp(s)
    p = p * pl.reciprocal(jnp.sum(p, axis=-1, keepdims=True), approx=False)
    c = jnp.einsum('gqk,gkd->gqd', p, v,
                   preferred_element_type=jnp.float32)                  # (G,S,HD)

    # per-head output projection, then reduce over heads (leading-dim sum;
    # replaces the lane-dim head concat).
    og = jnp.einsum('gqd,gde->gqe', c, wo_ref[...],
                    preferred_element_type=jnp.float32)                 # (G,S,D)
    attended = (jnp.sum(og.reshape(B, NH, S, D), axis=1).reshape(B * S, D)
                + bo_ref[0])                                            # (B*S,D)

    # ---- residual + LayerNorm1 (single-pass stats) ----
    x1 = x + attended
    mu1 = jnp.mean(x1, axis=-1, keepdims=True)
    var1 = jnp.mean(x1 * x1, axis=-1, keepdims=True) - mu1 * mu1
    x1n = (x1 - mu1) * jax.lax.rsqrt(var1 + EPS) * g1_ref[0] + beta1_ref[0]

    # ---- feed-forward network ----
    h1 = jnp.dot(x1n, w1_ref[...], preferred_element_type=jnp.float32) + b1_ref[0]
    h1 = jnp.maximum(h1, 0.0)
    ff = jnp.dot(h1, w2_ref[...], preferred_element_type=jnp.float32) + b2_ref[0]

    # ---- residual + LayerNorm2 (single-pass stats) ----
    x2 = x1n + ff
    mu2 = jnp.mean(x2, axis=-1, keepdims=True)
    var2 = jnp.mean(x2 * x2, axis=-1, keepdims=True) - mu2 * mu2
    out = (x2 - mu2) * jax.lax.rsqrt(var2 + EPS) * g2_ref[0] + beta2_ref[0]

    o_ref[...] = out.astype(o_ref.dtype)


def transformer_layer(x, params):
    (w_in, b_in, w_out, b_out, w1, b1, w2, b2, g1, beta1, g2, beta2) = params
    scale = 1.0 / math.sqrt(HD)

    # ---- host-side weight preparation (free; done once) ----
    def head_weights(w_rows, do_scale):
        # w_rows: (D, D) PyTorch layout (rows = output feature h*HD+f).
        w = w_rows.reshape(NH, HD, D).transpose(0, 2, 1)   # (NH, D, HD)
        if do_scale:
            w = w * scale
        return jnp.tile(w, (B, 1, 1))                      # (G, D, HD), g = b*NH+h

    def head_bias(b_row, do_scale):
        b = b_row.reshape(NH, 1, HD)
        if do_scale:
            b = b * scale
        return jnp.tile(b, (B, 1, 1))                      # (G, 1, HD)

    wq = head_weights(w_in[:D], True)           # scale folded into q proj
    wk = head_weights(w_in[D:2 * D], False)
    wv = head_weights(w_in[2 * D:], False)
    bq = head_bias(b_in[0, :D], True)
    bk = head_bias(b_in[0, D:2 * D], False)
    bv = head_bias(b_in[0, 2 * D:], False)
    wo = jnp.tile(w_out.T.reshape(NH, HD, D), (B, 1, 1))   # (G, HD, D)
    w1_t = w1.T                                            # (D, F)
    w2_t = w2.T                                            # (F, D)

    x2d = x.reshape(B * S, D)                              # fold batch (host-side)

    args = (x2d, wq, bq, wk, bk, wv, bv, wo, b_out,
            w1_t, b1, w2_t, b2, g1, beta1, g2, beta2)

    def full_spec(a):
        nd = a.ndim
        return pl.BlockSpec(a.shape, lambda i, nd=nd: (0,) * nd)

    out2d = pl.pallas_call(
        transformer_layer_kernel,
        out_shape=jax.ShapeDtypeStruct((B * S, D), x.dtype),
        grid=(1,),                                         # single step, batch folded
        in_specs=[full_spec(a) for a in args],
        out_specs=pl.BlockSpec((B * S, D), lambda i: (0, 0)),
        compiler_params=pltpu.CompilerParams(
            dimension_semantics=("arbitrary",)),
    )(*args)
    return out2d.reshape(B, S, D)


def reference(x, params):
    """Pure-JAX reference with the module's math (eval mode, no mask)."""
    (w_in, b_in, w_out, b_out, w1, b1, w2, b2, g1, beta1, g2, beta2) = params
    qkv = jnp.einsum('bsd,ed->bse', x, w_in) + b_in[0]
    q, k, v = qkv[..., :D], qkv[..., D:2 * D], qkv[..., 2 * D:]
    qh = q.reshape(B, S, NH, HD).transpose(0, 2, 1, 3)
    kh = k.reshape(B, S, NH, HD).transpose(0, 2, 1, 3)
    vh = v.reshape(B, S, NH, HD).transpose(0, 2, 1, 3)
    s = jnp.einsum('bhqd,bhkd->bhqk', qh, kh) / math.sqrt(HD)
    p = jax.nn.softmax(s, axis=-1)
    a = jnp.einsum('bhqk,bhkd->bhqd', p, vh).transpose(0, 2, 1, 3).reshape(B, S, D)
    attended = jnp.einsum('bsd,ed->bse', a, w_out) + b_out[0]

    def ln(z, g, bta):
        mu = jnp.mean(z, -1, keepdims=True)
        var = jnp.mean((z - mu) ** 2, -1, keepdims=True)
        return (z - mu) / jnp.sqrt(var + EPS) * g[0] + bta[0]

    x1 = ln(x + attended, g1, beta1)
    h1 = jnp.maximum(jnp.einsum('bsd,fd->bsf', x1, w1) + b1[0], 0.0)
    ff = jnp.einsum('bsf,df->bsd', h1, w2) + b2[0]
    return ln(x1 + ff, g2, beta2)


def make_params(key):
    ks = jax.random.split(key, 8)
    w_in = jax.random.normal(ks[0], (3 * D, D), jnp.float32) * (1.0 / math.sqrt(D))
    b_in = jax.random.normal(ks[1], (1, 3 * D), jnp.float32) * 0.02
    w_out = jax.random.normal(ks[2], (D, D), jnp.float32) * (1.0 / math.sqrt(D))
    b_out = jax.random.normal(ks[3], (1, D), jnp.float32) * 0.02
    w1 = jax.random.normal(ks[4], (F, D), jnp.float32) * (1.0 / math.sqrt(D))
    b1 = jax.random.normal(ks[5], (1, F), jnp.float32) * 0.02
    w2 = jax.random.normal(ks[6], (D, F), jnp.float32) * (1.0 / math.sqrt(F))
    b2 = jax.random.normal(ks[7], (1, D), jnp.float32) * 0.02
    g1 = jnp.ones((1, D), jnp.float32)
    beta1 = jnp.zeros((1, D), jnp.float32)
    g2 = jnp.ones((1, D), jnp.float32)
    beta2 = jnp.zeros((1, D), jnp.float32)
    return (w_in, b_in, w_out, b_out, w1, b1, w2, b2, g1, beta1, g2, beta2)


if __name__ == "__main__":
    key = jax.random.PRNGKey(0)
    kx, kp = jax.random.split(key)
    x = jax.random.normal(kx, (B, S, D), jnp.float32)
    params = make_params(kp)

    out = transformer_layer(x, params)
    out = jax.block_until_ready(out)

    ref = jax.block_until_ready(reference(x, params))
    assert out.shape == (B, S, D)
    assert jnp.all(jnp.isfinite(out))
    assert jnp.allclose(out, ref, atol=1e-4, rtol=1e-4), "mismatch vs JAX reference"
    print("KERNEL_OK")
</pallas_src>

<mosaic_0001>
module attributes {stable_mosaic.version = 11 : i64} {
  func.func @transformer_layer_kernel(%arg0: i32, %arg1: memref<16x32xf32, #tpu.memory_space<vmem>>, %arg2: memref<8x32x8xf32, #tpu.memory_space<vmem>>, %arg3: memref<8x1x8xf32, #tpu.memory_space<vmem>>, %arg4: memref<8x32x8xf32, #tpu.memory_space<vmem>>, %arg5: memref<8x1x8xf32, #tpu.memory_space<vmem>>, %arg6: memref<8x32x8xf32, #tpu.memory_space<vmem>>, %arg7: memref<8x1x8xf32, #tpu.memory_space<vmem>>, %arg8: memref<8x8x32xf32, #tpu.memory_space<vmem>>, %arg9: memref<1x32xf32, #tpu.memory_space<vmem>>, %arg10: memref<32x64xf32, #tpu.memory_space<vmem>>, %arg11: memref<1x64xf32, #tpu.memory_space<vmem>>, %arg12: memref<64x32xf32, #tpu.memory_space<vmem>>, %arg13: memref<1x32xf32, #tpu.memory_space<vmem>>, %arg14: memref<1x32xf32, #tpu.memory_space<vmem>>, %arg15: memref<1x32xf32, #tpu.memory_space<vmem>>, %arg16: memref<1x32xf32, #tpu.memory_space<vmem>>, %arg17: memref<1x32xf32, #tpu.memory_space<vmem>>, %arg18: memref<16x32xf32, #tpu.memory_space<vmem>>) attributes {dimension_semantics = [#tpu.dimension_semantics<arbitrary>], iteration_bounds = array<i64: 1>, scalar_prefetch = 0 : i64, scratch_operands = 0 : i64, tpu.core_type = #tpu.core_type<tc>, window_params = [{pipeline_mode = #tpu.pipeline_mode<synchronous>, transform_indices = @transform_0, window_bounds = array<i64: 16, 32>}, {pipeline_mode = #tpu.pipeline_mode<synchronous>, transform_indices = @transform_1, window_bounds = array<i64: 8, 32, 8>}, {pipeline_mode = #tpu.pipeline_mode<synchronous>, transform_indices = @transform_2, window_bounds = array<i64: 8, 1, 8>}, {pipeline_mode = #tpu.pipeline_mode<synchronous>, transform_indices = @transform_3, window_bounds = array<i64: 8, 32, 8>}, {pipeline_mode = #tpu.pipeline_mode<synchronous>, transform_indices = @transform_4, window_bounds = array<i64: 8, 1, 8>}, {pipeline_mode = #tpu.pipeline_mode<synchronous>, transform_indices = @transform_5, window_bounds = array<i64: 8, 32, 8>}, {pipeline_mode = #tpu.pipeline_mode<synchronous>, transform_indices = @transform_6, window_bounds = array<i64: 8, 1, 8>}, {pipeline_mode = #tpu.pipeline_mode<synchronous>, transform_indices = @transform_7, window_bounds = array<i64: 8, 8, 32>}, {pipeline_mode = #tpu.pipeline_mode<synchronous>, transform_indices = @transform_8, window_bounds = array<i64: 1, 32>}, {pipeline_mode = #tpu.pipeline_mode<synchronous>, transform_indices = @transform_9, window_bounds = array<i64: 32, 64>}, {pipeline_mode = #tpu.pipeline_mode<synchronous>, transform_indices = @transform_10, window_bounds = array<i64: 1, 64>}, {pipeline_mode = #tpu.pipeline_mode<synchronous>, transform_indices = @transform_11, window_bounds = array<i64: 64, 32>}, {pipeline_mode = #tpu.pipeline_mode<synchronous>, transform_indices = @transform_12, window_bounds = array<i64: 1, 32>}, {pipeline_mode = #tpu.pipeline_mode<synchronous>, transform_indices = @transform_13, window_bounds = array<i64: 1, 32>}, {pipeline_mode = #tpu.pipeline_mode<synchronous>, transform_indices = @transform_14, window_bounds = array<i64: 1, 32>}, {pipeline_mode = #tpu.pipeline_mode<synchronous>, transform_indices = @transform_15, window_bounds = array<i64: 1, 32>}, {pipeline_mode = #tpu.pipeline_mode<synchronous>, transform_indices = @transform_16, window_bounds = array<i64: 1, 32>}, {pipeline_mode = #tpu.pipeline_mode<synchronous>, transform_indices = @transform_17, window_bounds = array<i64: 16, 32>}]} {
    %c0 = arith.constant 0 : index
    %c0_0 = arith.constant 0 : index
    %0 = vector.load %arg1[%c0, %c0_0] : memref<16x32xf32, #tpu.memory_space<vmem>>, vector<16x32xf32>
    %1 = vector.shape_cast %0 : vector<16x32xf32> to vector<2x8x32xf32>
    %2 = vector.shape_cast %1 : vector<2x8x32xf32> to vector<2x1x8x32xf32>
    %3 = vector.shape_cast %2 : vector<2x1x8x32xf32> to vector<2x1x8x32xf32>
    %4 = vector.broadcast %3 : vector<2x1x8x32xf32> to vector<2x4x8x32xf32>
    %5 = vector.shape_cast %4 : vector<2x4x8x32xf32> to vector<8x8x32xf32>
    %c0_1 = arith.constant 0 : index
    %c0_2 = arith.constant 0 : index
    %c0_3 = arith.constant 0 : index
    %6 = vector.load %arg2[%c0_1, %c0_2, %c0_3] : memref<8x32x8xf32, #tpu.memory_space<vmem>>, vector<8x32x8xf32>
    "tpu.trace_start"() <{level = 10 : i32, message = "gsd,gdf->gsf"}> : () -> ()
    %cst = arith.constant dense<0.000000e+00> : vector<8x8x8xf32>
    %7 = tpu.matmul %5, %6, %cst {dimension_numbers = #tpu.dot_dimension_numbers<[2], [1], [1], [2], [0, 0, 0, 1, 1, 2], [0], [0]>} : vector<8x8x32xf32>, vector<8x32x8xf32>, vector<8x8x8xf32> -> vector<8x8x8xf32>
    "tpu.trace_stop"() : () -> ()
    %c0_4 = arith.constant 0 : index
    %c0_5 = arith.constant 0 : index
    %c0_6 = arith.constant 0 : index
    %8 = vector.load %arg3[%c0_4, %c0_5, %c0_6] : memref<8x1x8xf32, #tpu.memory_space<vmem>>, vector<8x1x8xf32>
    %9 = vector.broadcast %8 : vector<8x1x8xf32> to vector<8x8x8xf32>
    %10 = arith.addf %7, %9 : vector<8x8x8xf32>
    %c0_7 = arith.constant 0 : index
    %c0_8 = arith.constant 0 : index
    %c0_9 = arith.constant 0 : index
    %11 = vector.load %arg4[%c0_7, %c0_8, %c0_9] : memref<8x32x8xf32, #tpu.memory_space<vmem>>, vector<8x32x8xf32>
    "tpu.trace_start"() <{level = 10 : i32, message = "gsd,gdf->gsf"}> : () -> ()
    %cst_10 = arith.constant dense<0.000000e+00> : vector<8x8x8xf32>
    %12 = tpu.matmul %5, %11, %cst_10 {dimension_numbers = #tpu.dot_dimension_numbers<[2], [1], [1], [2], [0, 0, 0, 1, 1, 2], [0], [0]>} : vector<8x8x32xf32>, vector<8x32x8xf32>, vector<8x8x8xf32> -> vector<8x8x8xf32>
    "tpu.trace_stop"() : () -> ()
    %c0_11 = arith.constant 0 : index
    %c0_12 = arith.constant 0 : index
    %c0_13 = arith.constant 0 : index
    %13 = vector.load %arg5[%c0_11, %c0_12, %c0_13] : memref<8x1x8xf32, #tpu.memory_space<vmem>>, vector<8x1x8xf32>
    %14 = vector.broadcast %13 : vector<8x1x8xf32> to vector<8x8x8xf32>
    %15 = arith.addf %12, %14 : vector<8x8x8xf32>
    %c0_14 = arith.constant 0 : index
    %c0_15 = arith.constant 0 : index
    %c0_16 = arith.constant 0 : index
    %16 = vector.load %arg6[%c0_14, %c0_15, %c0_16] : memref<8x32x8xf32, #tpu.memory_space<vmem>>, vector<8x32x8xf32>
    "tpu.trace_start"() <{level = 10 : i32, message = "gsd,gdf->gsf"}> : () -> ()
    %cst_17 = arith.constant dense<0.000000e+00> : vector<8x8x8xf32>
    %17 = tpu.matmul %5, %16, %cst_17 {dimension_numbers = #tpu.dot_dimension_numbers<[2], [1], [1], [2], [0, 0, 0, 1, 1, 2], [0], [0]>} : vector<8x8x32xf32>, vector<8x32x8xf32>, vector<8x8x8xf32> -> vector<8x8x8xf32>
    "tpu.trace_stop"() : () -> ()
    %c0_18 = arith.constant 0 : index
    %c0_19 = arith.constant 0 : index
    %c0_20 = arith.constant 0 : index
    %18 = vector.load %arg7[%c0_18, %c0_19, %c0_20] : memref<8x1x8xf32, #tpu.memory_space<vmem>>, vector<8x1x8xf32>
    %19 = vector.broadcast %18 : vector<8x1x8xf32> to vector<8x8x8xf32>
    %20 = arith.addf %17, %19 : vector<8x8x8xf32>
    "tpu.trace_start"() <{level = 10 : i32, message = "gqd,gkd->gqk"}> : () -> ()
    %cst_21 = arith.constant dense<0.000000e+00> : vector<8x8x8xf32>
    %21 = tpu.matmul %10, %15, %cst_21 {dimension_numbers = #tpu.dot_dimension_numbers<[2], [2], [1], [1], [0, 0, 0, 1, 1, 1], [0], [0]>} : vector<8x8x8xf32>, vector<8x8x8xf32>, vector<8x8x8xf32> -> vector<8x8x8xf32>
    "tpu.trace_stop"() : () -> ()
    %cst_22 = arith.constant dense<0xFF800000> : vector<8x8xf32>
    %22 = vector.multi_reduction <maximumf>, %21, %cst_22 [2] : vector<8x8x8xf32> to vector<8x8xf32>
    %23 = vector.shape_cast %22 : vector<8x8xf32> to vector<8x8x1xf32>
    %24 = vector.broadcast %23 : vector<8x8x1xf32> to vector<8x8x8xf32>
    %25 = arith.subf %21, %24 : vector<8x8x8xf32>
    %26 = math.exp %25 : vector<8x8x8xf32>
    %cst_23 = arith.constant dense<0.000000e+00> : vector<8x8xf32>
    %27 = vector.multi_reduction <add>, %26, %cst_23 [2] : vector<8x8x8xf32> to vector<8x8xf32>
    %28 = vector.shape_cast %27 : vector<8x8xf32> to vector<8x8x1xf32>
    %29 = tpu.reciprocal %28 : vector<8x8x1xf32> -> vector<8x8x1xf32>
    %30 = vector.broadcast %29 : vector<8x8x1xf32> to vector<8x8x8xf32>
    %31 = arith.mulf %26, %30 : vector<8x8x8xf32>
    "tpu.trace_start"() <{level = 10 : i32, message = "gqk,gkd->gqd"}> : () -> ()
    %cst_24 = arith.constant dense<0.000000e+00> : vector<8x8x8xf32>
    %32 = tpu.matmul %31, %20, %cst_24 {dimension_numbers = #tpu.dot_dimension_numbers<[2], [1], [1], [2], [0, 0, 0, 1, 1, 2], [0], [0]>} : vector<8x8x8xf32>, vector<8x8x8xf32>, vector<8x8x8xf32> -> vector<8x8x8xf32>
    "tpu.trace_stop"() : () -> ()
    %c0_25 = arith.constant 0 : index
    %c0_26 = arith.constant 0 : index
    %c0_27 = arith.constant 0 : index
    %33 = vector.load %arg8[%c0_25, %c0_26, %c0_27] : memref<8x8x32xf32, #tpu.memory_space<vmem>>, vector<8x8x32xf32>
    "tpu.trace_start"() <{level = 10 : i32, message = "gqd,gde->gqe"}> : () -> ()
    %cst_28 = arith.constant dense<0.000000e+00> : vector<8x8x32xf32>
    %34 = tpu.matmul %32, %33, %cst_28 {dimension_numbers = #tpu.dot_dimension_numbers<[2], [1], [1], [2], [0, 0, 0, 1, 1, 2], [0], [0]>} : vector<8x8x8xf32>, vector<8x8x32xf32>, vector<8x8x32xf32> -> vector<8x8x32xf32>
    "tpu.trace_stop"() : () -> ()
    %35 = vector.shape_cast %34 : vector<8x8x32xf32> to vector<2x4x8x32xf32>
    %cst_29 = arith.constant dense<0.000000e+00> : vector<2x8x32xf32>
    %36 = vector.multi_reduction <add>, %35, %cst_29 [1] : vector<2x4x8x32xf32> to vector<2x8x32xf32>
    %37 = vector.shape_cast %36 : vector<2x8x32xf32> to vector<16x32xf32>
    %c0_30 = arith.constant 0 : index
    %c0_31 = arith.constant 0 : index
    %38 = vector.load %arg9[%c0_30, %c0_31] : memref<1x32xf32, #tpu.memory_space<vmem>>, vector<1x32xf32>
    %39 = vector.shape_cast %38 : vector<1x32xf32> to vector<32xf32>
    %40 = vector.shape_cast %39 : vector<32xf32> to vector<1x32xf32>
    %41 = vector.broadcast %40 : vector<1x32xf32> to vector<16x32xf32>
    %42 = arith.addf %37, %41 : vector<16x32xf32>
    %43 = arith.addf %0, %42 : vector<16x32xf32>
    %cst_32 = arith.constant dense<0.000000e+00> : vector<16xf32>
    %44 = vector.multi_reduction <add>, %43, %cst_32 [1] : vector<16x32xf32> to vector<16xf32>
    %45 = vector.shape_cast %44 : vector<16xf32> to vector<16x1xf32>
    %cst_33 = arith.constant 3.200000e+01 : f32
    %46 = vector.broadcast %cst_33 : f32 to vector<16x1xf32>
    %47 = arith.divf %45, %46 : vector<16x1xf32>
    %48 = arith.mulf %43, %43 : vector<16x32xf32>
    %cst_34 = arith.constant dense<0.000000e+00> : vector<16xf32>
    %49 = vector.multi_reduction <add>, %48, %cst_34 [1] : vector<16x32xf32> to vector<16xf32>
    %50 = vector.shape_cast %49 : vector<16xf32> to vector<16x1xf32>
    %cst_35 = arith.constant 3.200000e+01 : f32
    %51 = vector.broadcast %cst_35 : f32 to vector<16x1xf32>
    %52 = arith.divf %50, %51 : vector<16x1xf32>
    %53 = arith.mulf %47, %47 : vector<16x1xf32>
    %54 = arith.subf %52, %53 : vector<16x1xf32>
    %55 = vector.broadcast %47 : vector<16x1xf32> to vector<16x32xf32>
    %56 = arith.subf %43, %55 : vector<16x32xf32>
    %cst_36 = arith.constant 9.99999974E-6 : f32
    %57 = vector.broadcast %cst_36 : f32 to vector<16x1xf32>
    %58 = arith.addf %54, %57 : vector<16x1xf32>
    %59 = math.rsqrt %58 : vector<16x1xf32>
    %60 = vector.broadcast %59 : vector<16x1xf32> to vector<16x32xf32>
    %61 = arith.mulf %56, %60 : vector<16x32xf32>
    %c0_37 = arith.constant 0 : index
    %c0_38 = arith.constant 0 : index
    %62 = vector.load %arg14[%c0_37, %c0_38] : memref<1x32xf32, #tpu.memory_space<vmem>>, vector<1x32xf32>
    %63 = vector.shape_cast %62 : vector<1x32xf32> to vector<32xf32>
    %64 = vector.shape_cast %63 : vector<32xf32> to vector<1x32xf32>
    %65 = vector.broadcast %64 : vector<1x32xf32> to vector<16x32xf32>
    %66 = arith.mulf %61, %65 : vector<16x32xf32>
    %c0_39 = arith.constant 0 : index
    %c0_40 = arith.constant 0 : index
    %67 = vector.load %arg15[%c0_39, %c0_40] : memref<1x32xf32, #tpu.memory_space<vmem>>, vector<1x32xf32>
    %68 = vector.shape_cast %67 : vector<1x32xf32> to vector<32xf32>
    %69 = vector.shape_cast %68 : vector<32xf32> to vector<1x32xf32>
    %70 = vector.broadcast %69 : vector<1x32xf32> to vector<16x32xf32>
    %71 = arith.addf %66, %70 : vector<16x32xf32>
    %c0_41 = arith.constant 0 : index
    %c0_42 = arith.constant 0 : index
    %72 = vector.load %arg10[%c0_41, %c0_42] : memref<32x64xf32, #tpu.memory_space<vmem>>, vector<32x64xf32>
    %cst_43 = arith.constant dense<0.000000e+00> : vector<16x64xf32>
    %73 = tpu.matmul %71, %72, %cst_43 {dimension_numbers = #tpu.dot_dimension_numbers<[1], [0], [0], [1], [0, 0, 1, 1], [], []>} : vector<16x32xf32>, vector<32x64xf32>, vector<16x64xf32> -> vector<16x64xf32>
    %c0_44 = arith.constant 0 : index
    %c0_45 = arith.constant 0 : index
    %74 = vector.load %arg11[%c0_44, %c0_45] : memref<1x64xf32, #tpu.memory_space<vmem>>, vector<1x64xf32>
    %75 = vector.shape_cast %74 : vector<1x64xf32> to vector<64xf32>
    %76 = vector.shape_cast %75 : vector<64xf32> to vector<1x64xf32>
    %77 = vector.broadcast %76 : vector<1x64xf32> to vector<16x64xf32>
    %78 = arith.addf %73, %77 : vector<16x64xf32>
    %cst_46 = arith.constant 0.000000e+00 : f32
    %79 = vector.broadcast %cst_46 : f32 to vector<16x64xf32>
    %80 = arith.maximumf %78, %79 : vector<16x64xf32>
    %c0_47 = arith.constant 0 : index
    %c0_48 = arith.constant 0 : index
    %81 = vector.load %arg12[%c0_47, %c0_48] : memref<64x32xf32, #tpu.memory_space<vmem>>, vector<64x32xf32>
    %cst_49 = arith.constant dense<0.000000e+00> : vector<16x32xf32>
    %82 = tpu.matmul %80, %81, %cst_49 {dimension_numbers = #tpu.dot_dimension_numbers<[1], [0], [0], [1], [0, 0, 1, 1], [], []>} : vector<16x64xf32>, vector<64x32xf32>, vector<16x32xf32> -> vector<16x32xf32>
    %c0_50 = arith.constant 0 : index
    %c0_51 = arith.constant 0 : index
    %83 = vector.load %arg13[%c0_50, %c0_51] : memref<1x32xf32, #tpu.memory_space<vmem>>, vector<1x32xf32>
    %84 = vector.shape_cast %83 : vector<1x32xf32> to vector<32xf32>
    %85 = vector.shape_cast %84 : vector<32xf32> to vector<1x32xf32>
    %86 = vector.broadcast %85 : vector<1x32xf32> to vector<16x32xf32>
    %87 = arith.addf %82, %86 : vector<16x32xf32>
    %88 = arith.addf %71, %87 : vector<16x32xf32>
    %cst_52 = arith.constant dense<0.000000e+00> : vector<16xf32>
    %89 = vector.multi_reduction <add>, %88, %cst_52 [1] : vector<16x32xf32> to vector<16xf32>
    %90 = vector.shape_cast %89 : vector<16xf32> to vector<16x1xf32>
    %cst_53 = arith.constant 3.200000e+01 : f32
    %91 = vector.broadcast %cst_53 : f32 to vector<16x1xf32>
    %92 = arith.divf %90, %91 : vector<16x1xf32>
    %93 = arith.mulf %88, %88 : vector<16x32xf32>
    %cst_54 = arith.constant dense<0.000000e+00> : vector<16xf32>
    %94 = vector.multi_reduction <add>, %93, %cst_54 [1] : vector<16x32xf32> to vector<16xf32>
    %95 = vector.shape_cast %94 : vector<16xf32> to vector<16x1xf32>
    %cst_55 = arith.constant 3.200000e+01 : f32
    %96 = vector.broadcast %cst_55 : f32 to vector<16x1xf32>
    %97 = arith.divf %95, %96 : vector<16x1xf32>
    %98 = arith.mulf %92, %92 : vector<16x1xf32>
    %99 = arith.subf %97, %98 : vector<16x1xf32>
    %100 = vector.broadcast %92 : vector<16x1xf32> to vector<16x32xf32>
    %101 = arith.subf %88, %100 : vector<16x32xf32>
    %cst_56 = arith.constant 9.99999974E-6 : f32
    %102 = vector.broadcast %cst_56 : f32 to vector<16x1xf32>
    %103 = arith.addf %99, %102 : vector<16x1xf32>
    %104 = math.rsqrt %103 : vector<16x1xf32>
    %105 = vector.broadcast %104 : vector<16x1xf32> to vector<16x32xf32>
    %106 = arith.mulf %101, %105 : vector<16x32xf32>
    %c0_57 = arith.constant 0 : index
    %c0_58 = arith.constant 0 : index
    %107 = vector.load %arg16[%c0_57, %c0_58] : memref<1x32xf32, #tpu.memory_space<vmem>>, vector<1x32xf32>
    %108 = vector.shape_cast %107 : vector<1x32xf32> to vector<32xf32>
    %109 = vector.shape_cast %108 : vector<32xf32> to vector<1x32xf32>
    %110 = vector.broadcast %109 : vector<1x32xf32> to vector<16x32xf32>
    %111 = arith.mulf %106, %110 : vector<16x32xf32>
    %c0_59 = arith.constant 0 : index
    %c0_60 = arith.constant 0 : index
    %112 = vector.load %arg17[%c0_59, %c0_60] : memref<1x32xf32, #tpu.memory_space<vmem>>, vector<1x32xf32>
    %113 = vector.shape_cast %112 : vector<1x32xf32> to vector<32xf32>
    %114 = vector.shape_cast %113 : vector<32xf32> to vector<1x32xf32>
    %115 = vector.broadcast %114 : vector<1x32xf32> to vector<16x32xf32>
    %116 = arith.addf %111, %115 : vector<16x32xf32>
    %c0_61 = arith.constant 0 : index
    %c0_62 = arith.constant 0 : index
    %117 = vector.load %arg18[%c0_61, %c0_62] : memref<16x32xf32, #tpu.memory_space<vmem>>, vector<16x32xf32>
    tpu.vector_store %arg18[%c0_61, %c0_62], %116 {strides = array<i32>} : memref<16x32xf32, #tpu.memory_space<vmem>>, vector<16x32xf32>,
    return
  }
  func.func @transform_0(%arg0: i32) -> (i32, i32) {
    %c0_i32 = arith.constant 0 : i32
    %c0_i32_0 = arith.constant 0 : i32
    %c0_i32_1 = arith.constant 0 : i32
    return %c0_i32, %c0_i32_0 : i32, i32
  }
  func.func @transform_1(%arg0: i32) -> (i32, i32, i32) {
    %c0_i32 = arith.constant 0 : i32
    %c0_i32_0 = arith.constant 0 : i32
    %c0_i32_1 = arith.constant 0 : i32
    %c0_i32_2 = arith.constant 0 : i32
    return %c0_i32, %c0_i32_0, %c0_i32_1 : i32, i32, i32
  }
  func.func @transform_2(%arg0: i32) -> (i32, i32, i32) {
    %c0_i32 = arith.constant 0 : i32
    %c0_i32_0 = arith.constant 0 : i32
    %c0_i32_1 = arith.constant 0 : i32
    %c0_i32_2 = arith.constant 0 : i32
    return %c0_i32, %c0_i32_0, %c0_i32_1 : i32, i32, i32
  }
  func.func @transform_3(%arg0: i32) -> (i32, i32, i32) {
    %c0_i32 = arith.constant 0 : i32
    %c0_i32_0 = arith.constant 0 : i32
    %c0_i32_1 = arith.constant 0 : i32
    %c0_i32_2 = arith.constant 0 : i32
    return %c0_i32, %c0_i32_0, %c0_i32_1 : i32, i32, i32
  }
  func.func @transform_4(%arg0: i32) -> (i32, i32, i32) {
    %c0_i32 = arith.constant 0 : i32
    %c0_i32_0 = arith.constant 0 : i32
    %c0_i32_1 = arith.constant 0 : i32
    %c0_i32_2 = arith.constant 0 : i32
    return %c0_i32, %c0_i32_0, %c0_i32_1 : i32, i32, i32
  }
  func.func @transform_5(%arg0: i32) -> (i32, i32, i32) {
    %c0_i32 = arith.constant 0 : i32
    %c0_i32_0 = arith.constant 0 : i32
    %c0_i32_1 = arith.constant 0 : i32
    %c0_i32_2 = arith.constant 0 : i32
    return %c0_i32, %c0_i32_0, %c0_i32_1 : i32, i32, i32
  }
  func.func @transform_6(%arg0: i32) -> (i32, i32, i32) {
    %c0_i32 = arith.constant 0 : i32
    %c0_i32_0 = arith.constant 0 : i32
    %c0_i32_1 = arith.constant 0 : i32
    %c0_i32_2 = arith.constant 0 : i32
    return %c0_i32, %c0_i32_0, %c0_i32_1 : i32, i32, i32
  }
  func.func @transform_7(%arg0: i32) -> (i32, i32, i32) {
    %c0_i32 = arith.constant 0 : i32
    %c0_i32_0 = arith.constant 0 : i32
    %c0_i32_1 = arith.constant 0 : i32
    %c0_i32_2 = arith.constant 0 : i32
    return %c0_i32, %c0_i32_0, %c0_i32_1 : i32, i32, i32
  }
  func.func @transform_8(%arg0: i32) -> (i32, i32) {
    %c0_i32 = arith.constant 0 : i32
    %c0_i32_0 = arith.constant 0 : i32
    %c0_i32_1 = arith.constant 0 : i32
    return %c0_i32, %c0_i32_0 : i32, i32
  }
  func.func @transform_9(%arg0: i32) -> (i32, i32) {
    %c0_i32 = arith.constant 0 : i32
    %c0_i32_0 = arith.constant 0 : i32
    %c0_i32_1 = arith.constant 0 : i32
    return %c0_i32, %c0_i32_0 : i32, i32
  }
  func.func @transform_10(%arg0: i32) -> (i32, i32) {
    %c0_i32 = arith.constant 0 : i32
    %c0_i32_0 = arith.constant 0 : i32
    %c0_i32_1 = arith.constant 0 : i32
    return %c0_i32, %c0_i32_0 : i32, i32
  }
  func.func @transform_11(%arg0: i32) -> (i32, i32) {
    %c0_i32 = arith.constant 0 : i32
    %c0_i32_0 = arith.constant 0 : i32
    %c0_i32_1 = arith.constant 0 : i32
    return %c0_i32, %c0_i32_0 : i32, i32
  }
  func.func @transform_12(%arg0: i32) -> (i32, i32) {
    %c0_i32 = arith.constant 0 : i32
    %c0_i32_0 = arith.constant 0 : i32
    %c0_i32_1 = arith.constant 0 : i32
    return %c0_i32, %c0_i32_0 : i32, i32
  }
  func.func @transform_13(%arg0: i32) -> (i32, i32) {
    %c0_i32 = arith.constant 0 : i32
    %c0_i32_0 = arith.constant 0 : i32
    %c0_i32_1 = arith.constant 0 : i32
    return %c0_i32, %c0_i32_0 : i32, i32
  }
  func.func @transform_14(%arg0: i32) -> (i32, i32) {
    %c0_i32 = arith.constant 0 : i32
    %c0_i32_0 = arith.constant 0 : i32
    %c0_i32_1 = arith.constant 0 : i32
    return %c0_i32, %c0_i32_0 : i32, i32
  }
  func.func @transform_15(%arg0: i32) -> (i32, i32) {
    %c0_i32 = arith.constant 0 : i32
    %c0_i32_0 = arith.constant 0 : i32
    %c0_i32_1 = arith.constant 0 : i32
    return %c0_i32, %c0_i32_0 : i32, i32
  }
  func.func @transform_16(%arg0: i32) -> (i32, i32) {
    %c0_i32 = arith.constant 0 : i32
    %c0_i32_0 = arith.constant 0 : i32
    %c0_i32_1 = arith.constant 0 : i32
    return %c0_i32, %c0_i32_0 : i32, i32
  }
  func.func @transform_17(%arg0: i32) -> (i32, i32) {
    %c0_i32 = arith.constant 0 : i32
    %c0_i32_0 = arith.constant 0 : i32
    %c0_i32_1 = arith.constant 0 : i32
    return %c0_i32, %c0_i32_0 : i32, i32
  }
}

</mosaic_0001>

<bundles_post_ra>
// kernel: tpu_custom_call.1
= control target key start
LH: loop header
LB: loop body
LE: loop exit
PB: predicated region body
PF: predicated region fallthrough
CT: control target
= control target key end

     0   :  { %s6040_s0 = inlined_call_operand.vmem [shape: f32[16,32], index: 0, kind: input, shape index: {}]   ;;  %s6041_s1 = inlined_call_operand.vmem [shape: f32[8,32,8], index: 1, kind: input, shape index: {}]   ;;  %s6042_s2 = inlined_call_operand.vmem [shape: f32[8,1,8], index: 2, kind: input, shape index: {}]   ;;  %s6043_s3 = inlined_call_operand.vmem [shape: f32[8,32,8], index: 3, kind: input, shape index: {}]   ;;  %s6044_s4 = inlined_call_operand.vmem [shape: f32[8,1,8], index: 4, kind: input, shape index: {}]   ;;  %s6045_s5 = inlined_call_operand.vmem [shape: f32[8,32,8], index: 5, kind: input, shape index: {}]   ;;  %s6046_s6 = inlined_call_operand.vmem [shape: f32[8,1,8], index: 6, kind: input, shape index: {}]   ;;  %s6047_s7 = inlined_call_operand.vmem [shape: f32[8,8,32], index: 7, kind: input, shape index: {}]   ;;  %s6048_s8 = inlined_call_operand.vmem [shape: f32[1,32], index: 8, kind: input, shape index: {}]   ;;  %s6049_s9 = inlined_call_operand.vmem [shape: f32[32,64], index: 9, kind: input, shape index: {}]   ;;  %s6050_s10 = inlined_call_operand.vmem [shape: f32[1,64], index: 10, kind: input, shape index: {}]   ;;  %s6051_s11 = inlined_call_operand.vmem [shape: f32[64,32], index: 11, kind: input, shape index: {}]   ;;  %s6052_s12 = inlined_call_operand.vmem [shape: f32[1,32], index: 12, kind: input, shape index: {}]   ;;  %s6053_s13 = inlined_call_operand.vmem [shape: f32[1,32], index: 13, kind: input, shape index: {}]   ;;  %s6054_s14 = inlined_call_operand.vmem [shape: f32[1,32], index: 14, kind: input, shape index: {}]   ;;  %s6055_s15 = inlined_call_operand.vmem [shape: f32[1,32], index: 15, kind: input, shape index: {}]   ;;  %s6056_s16 = inlined_call_operand.vmem [shape: f32[1,32], index: 16, kind: input, shape index: {}]   ;;  %s6057_s17 = inlined_call_operand.hbm [shape: f32[16,32], index: 17, kind: output, shape index: {}]  }
   0x1   :  { %6060 = sst [smem:[#allocation5_spill]] %s6040_s0 }
   0x2   :  { %6061 = sst [smem:[#allocation6_spill]] %s6041_s1 }
   0x3   :  { %s6062_s26 = sld [smem:[#allocation6_spill]]  ;;  %v5145_v3 = vmov 0.0|0.0   ;;  %vm5146_vm0 = vmmov 0   ;;  %v5147_v11 = vmov 0.0   ;;  %s6063_s22 = sld [smem:[#allocation5_spill]]  ;;  %vm147_vm1 = vcmask 261120  }
   0x4   :  { %4905 = vmatprep.subr.bf16.mxu0 %v5145_v3  ;;  %4911 = vmatprep.subr.bf16.mxu1 %v5145_v3 }
   0x5   :  { %4499 = vmatprep.mubr.msk.f32.mxu0 %vm5146_vm0, %v5147_v11  ;;  %4510 = vmatprep.mubr.msk.f32.mxu1 %vm5146_vm0, %v5147_v11 }
   0x9   :  { %v59_v0 = vld [vmem:[%s6062_s26] sm:$0xff]  ;;  %v60_v1 = vld [vmem:[%s6062_s26 + $0x8] sm:$0xff]  ;;  %v61_v6 = vld [vmem:[%s6062_s26 + $0x10] sm:$0xff] }
   0xa   :  { %v63_v2 = vld [vmem:[%s6062_s26 + $0x20] sm:$0xff]  ;;  %v4906_v4 = vpack.c.bf16 %v60_v1, %v59_v0  ;;  %v64_v5 = vld [vmem:[%s6062_s26 + $0x28] sm:$0xff]  ;;  %v62_v7 = vld [vmem:[%s6062_s26 + $0x18] sm:$0xff] }
   0xb   :  { %v4912_v8 = vpack.c.bf16 %v64_v5, %v63_v2  ;;  %v65_v9 = vld [vmem:[%s6062_s26 + $0x30] sm:$0xff]  ;;  %v66_v10 = vld [vmem:[%s6062_s26 + $0x38] sm:$0xff]  ;;  %v4909_v12 = vpack.c.bf16 %v62_v7, %v61_v6  ;;  %v67_v14 = vld [vmem:[%s6062_s26 + $0x40] sm:$0xff] }
   0xc   :  { %4907 = vmatpush3.bf16.msra.mxu0 %v4906_v4  ;;  %v4915_v13 = vpack.c.bf16 %v66_v10, %v65_v9  ;;  %v68_v15 = vld [vmem:[%s6062_s26 + $0x48] sm:$0xff]  ;;  %v71_v16 = vld [vmem:[%s6062_s26 + $0x60] sm:$0xff]  ;;  %v69_v21 = vld [vmem:[%s6062_s26 + $0x50] sm:$0xff] }
   0xd   :  { %4913 = vmatpush3.bf16.msra.mxu1 %v4912_v8  ;;  %4908 = vmatprep.subr.bf16.mxu0 %v5145_v3  ;;  %v72_v17 = vld [vmem:[%s6062_s26 + $0x68] sm:$0xff]  ;;  %v5288_v18 = vld [vmem:[%s6063_s22] sm:$0xff]  ;;  %v4918_v19 = vpack.c.bf16 %v68_v15, %v67_v14  ;;  %v70_v22 = vld [vmem:[%s6062_s26 + $0x58] sm:$0xff] }
   0xe   :  { %4914 = vmatprep.subr.bf16.mxu1 %v5145_v3  ;;  %v4924_v20 = vpack.c.bf16 %v72_v17, %v71_v16  ;;  %v73_v23 = vld [vmem:[%s6062_s26 + $0x70] sm:$0xff]  ;;  %v74_v24 = vld [vmem:[%s6062_s26 + $0x78] sm:$0xff]  ;;  %v4921_v25 = vpack.c.bf16 %v70_v22, %v69_v21  ;;  %v75_v27 = vld [vmem:[%s6062_s26 + $0x80] sm:$0xff] }
   0xf   :  { %v4927_v26 = vpack.c.bf16 %v74_v24, %v73_v23  ;;  %v76_v28 = vld [vmem:[%s6062_s26 + $0x88] sm:$0xff]  ;;  %v79_v29 = vld [vmem:[%s6062_s26 + $0xa0] sm:$0xff]  ;;  %v77_v33 = vld [vmem:[%s6062_s26 + $0x90] sm:$0xff] }
  0x10   :  { %4910 = vmatpush3.bf16.msra.mxu0 %v4909_v12  ;;  %v80_v30 = vld [vmem:[%s6062_s26 + $0xa8] sm:$0xff]  ;;  %v4930_v31 = vpack.c.bf16 %v76_v28, %v75_v27  ;;  %v78_v34 = vld [vmem:[%s6062_s26 + $0x98] sm:$0xff]  ;;  %v81_v35 = vld [vmem:[%s6062_s26 + $0xb0] sm:$0xff] }
  0x11   :  { %4916 = vmatpush3.bf16.msra.mxu1 %v4915_v13  ;;  %4917 = vmatprep.subr.bf16.mxu0 %v5145_v3  ;;  %v4936_v32 = vpack.c.bf16 %v80_v30, %v79_v29  ;;  %v82_v36 = vld [vmem:[%s6062_s26 + $0xb8] sm:$0xff]  ;;  %v4933_v37 = vpack.c.bf16 %v78_v34, %v77_v33  ;;  %v83_v39 = vld [vmem:[%s6062_s26 + $0xc0] sm:$0xff]  ;;  %v84_v40 = vld [vmem:[%s6062_s26 + $0xc8] sm:$0xff] }
  0x12   :  { %4923 = vmatprep.subr.bf16.mxu1 %v5145_v3  ;;  %v4939_v38 = vpack.c.bf16 %v82_v36, %v81_v35  ;;  %v87_v41 = vld [vmem:[%s6062_s26 + $0xe0] sm:$0xff]  ;;  %v88_v42 = vld [vmem:[%s6062_s26 + $0xe8] sm:$0xff]  ;;  %v4942_v44 = vpack.c.bf16 %v84_v40, %v83_v39 }
  0x13   :  { %4500 = vmatmul.mubr.msk.f32.vlgmr.msra.gmra.mrb[0].mxu0 %vm147_vm1, %v5288_v18  ;;  %v5365_v43 = vld [vmem:[%s6063_s22 + $0x8] sm:$0xff] }
  0x14   :  { %4511 = vmatmul.mubr.msk.f32.vlgmr.msra.gmra.mrb[0].mxu1 %vm147_vm1, %v5288_v18  ;;  %4919 = vmatpush3.bf16.msra.mxu0 %v4918_v19 }
  0x15   :  { %4925 = vmatpush3.bf16.msra.mxu1 %v4924_v20  ;;  %4920 = vmatprep.subr.bf16.mxu0 %v5145_v3 }
  0x16   :  { %4926 = vmatprep.subr.bf16.mxu1 %v5145_v3  ;;  %4521 = vmatprep.mubr.msk.f32.mxu0 %vm5146_vm0, %v5147_v11 }
  0x17   :  { %4532 = vmatprep.mubr.msk.f32.mxu1 %vm5146_vm0, %v5147_v11 }
  0x18   :  { %4922 = vmatpush3.bf16.msra.mxu0 %v4921_v25 }
  0x19   :  { %4928 = vmatpush3.bf16.msra.mxu1 %v4927_v26  ;;  %4929 = vmatprep.subr.bf16.mxu0 %v5145_v3 }
  0x1a   :  { %4935 = vmatprep.subr.bf16.mxu1 %v5145_v3 }
  0x1b   :  { %4522 = vmatmul.mubr.msk.f32.vlgmr.msra.gmra.mrb[2].mxu0 %vm147_vm1, %v5288_v18 }
  0x1c   :  { %4533 = vmatmul.mubr.msk.f32.vlgmr.msra.gmra.mrb[2].mxu1 %vm147_vm1, %v5288_v18  ;;  %4931 = vmatpush3.bf16.msra.mxu0 %v4930_v31 }
  0x1d   :  { %4937 = vmatpush3.bf16.msra.mxu1 %v4936_v32  ;;  %4932 = vmatprep.subr.bf16.mxu0 %v5145_v3 }
  0x1e   :  { %4938 = vmatprep.subr.bf16.mxu1 %v5145_v3  ;;  %4543 = vmatprep.mubr.msk.f32.mxu0 %vm5146_vm0, %v5147_v11 }
  0x1f   :  { %4554 = vmatprep.mubr.msk.f32.mxu1 %vm5146_vm0, %v5147_v11 }
  0x20   :  { %4934 = vmatpush3.bf16.msra.mxu0 %v4933_v37 }
  0x21   :  { %22 = vsyncpa [#allocation3], 0  ;;  %4940 = vmatpush3.bf16.msra.mxu1 %v4939_v38  ;;  %4941 = vmatprep.subr.bf16.mxu0 %v5145_v3  ;;  %v4948_v45 = vpack.c.bf16 %v88_v42, %v87_v41  ;;  %v85_v46 = vld [vmem:[%s6062_s26 + $0xd0] sm:$0xff]  ;;  %v86_v47 = vld [vmem:[%s6062_s26 + $0xd8] sm:$0xff]  ;;  %vm2010_vm2 = vcmask 64512   ;;  %vm4066_vm3 = vcmask 523264  }
  0x22   :  { %4947 = vmatprep.subr.bf16.mxu1 %v5145_v3  ;;  %v89_v48 = vld [vmem:[%s6062_s26 + $0xf0] sm:$0xff]  ;;  %v90_v49 = vld [vmem:[%s6062_s26 + $0xf8] sm:$0xff]  ;;  %v4945_v50 = vpack.c.bf16 %v86_v47, %v85_v46  ;;  %v714_v52 = vld [vmem:[%s6043_s3] sm:$0xff]  ;;  %s5148_s25 = smov [#allocation2]  }
  0x23   :  { %4544 = vmatmul.mubr.msk.f32.vlgmr.msra.gmra.mrb[4].mxu0 %vm147_vm1, %v5365_v43  ;;  %v4951_v51 = vpack.c.bf16 %v90_v49, %v89_v48  ;;  %v715_v53 = vld [vmem:[%s6043_s3 + $0x8] sm:$0xff]  ;;  %v718_v54 = vld [vmem:[%s6043_s3 + $0x20] sm:$0xff]  ;;  %v716_v58 = vld [vmem:[%s6043_s3 + $0x10] sm:$0xff]  ;;  %s4205_s27 = sshll.u32 %s5148_s25, 4  ;;  %s4206_s27 = int_to_ptr.vmem [resolvable:$true] %s4205_s27 }
  0x24   :  { %4555 = vmatmul.mubr.msk.f32.vlgmr.msra.gmra.mrb[4].mxu1 %vm147_vm1, %v5365_v43  ;;  %4943 = vmatpush3.bf16.msra.mxu0 %v4942_v44  ;;  %v719_v55 = vld [vmem:[%s6043_s3 + $0x28] sm:$0xff]  ;;  %v4954_v56 = vpack.c.bf16 %v715_v53, %v714_v52  ;;  %v717_v59 = vld [vmem:[%s6043_s3 + $0x18] sm:$0xff]  ;;  %v720_v60 = vld [vmem:[%s6043_s3 + $0x30] sm:$0xff]  ;;  %s5121_s28 = scalar_lea.vmem %s4206_s27, 256  ;;  %p5126_p1 = scmp.lt.s32.totalorder %s4206_s27, %s4206_s27 }
  0x25   :  { %4949 = vmatpush3.bf16.msra.mxu1 %v4948_v45  ;;  %4944 = vmatprep.subr.bf16.mxu0 %v5145_v3  ;;  %v4960_v57 = vpack.c.bf16 %v719_v55, %v718_v54  ;;  %v721_v61 = vld [vmem:[%s6043_s3 + $0x38] sm:$0xff]  ;;  %v4957_v62 = vpack.c.bf16 %v717_v59, %v716_v58  ;;  %v722_v0 = vld [vmem:[%s6043_s3 + $0x40] sm:$0xff]  ;;  %v723_v1 = vld [vmem:[%s6043_s3 + $0x48] sm:$0xff]  ;;  %p5122_p0 = scmp.ne.s32.totalorder %s4206_s27, %s5121_s28  ;;  %p5127_p2 = scmp.lt.s32.totalorder %s5121_s28, %s5121_s28 }
  0x26   :  { %4950 = vmatprep.subr.bf16.mxu1 %v5145_v3  ;;  %4565 = vmatprep.mubr.msk.f32.mxu0 %vm5146_vm0, %v5147_v11  ;;  %v4963_v63 = vpack.c.bf16 %v721_v61, %v720_v60  ;;  %v726_v2 = vld [vmem:[%s6043_s3 + $0x60] sm:$0xff]  ;;  %v727_v4 = vld [vmem:[%s6043_s3 + $0x68] sm:$0xff]  ;;  %v4966_v5 = vpack.c.bf16 %v723_v1, %v722_v0  ;;  %v724_v7 = vld [vmem:[%s6043_s3 + $0x50] sm:$0xff] }
  0x27   :  { %4576 = vmatprep.mubr.msk.f32.mxu1 %vm5146_vm0, %v5147_v11  ;;  %v4972_v6 = vpack.c.bf16 %v727_v4, %v726_v2  ;;  %v725_v8 = vld [vmem:[%s6043_s3 + $0x58] sm:$0xff]  ;;  %v728_v9 = vld [vmem:[%s6043_s3 + $0x70] sm:$0xff]  ;;  %v730_v14 = vld [vmem:[%s6043_s3 + $0x80] sm:$0xff]  ;;  %p5128_p3 = por %p5127_p2, %p5126_p1 }
  0x28   :  { %4946 = vmatpush3.bf16.msra.mxu0 %v4945_v50  ;;  %v729_v10 = vld [vmem:[%s6043_s3 + $0x78] sm:$0xff]  ;;  %v4969_v12 = vpack.c.bf16 %v725_v8, %v724_v7  ;;  %v731_v15 = vld [vmem:[%s6043_s3 + $0x88] sm:$0xff]  ;;  %v734_v16 = vld [vmem:[%s6043_s3 + $0xa0] sm:$0xff] }
  0x29   :  { %4952 = vmatpush3.bf16.msra.mxu1 %v4951_v51  ;;  %4953 = vmatprep.subr.bf16.mxu0 %v5145_v3  ;;  %v4975_v13 = vpack.c.bf16 %v729_v10, %v728_v9  ;;  %v735_v17 = vld [vmem:[%s6043_s3 + $0xa8] sm:$0xff]  ;;  %v4978_v19 = vpack.c.bf16 %v731_v15, %v730_v14  ;;  %v732_v21 = vld [vmem:[%s6043_s3 + $0x90] sm:$0xff]  ;;  %v733_v22 = vld [vmem:[%s6043_s3 + $0x98] sm:$0xff]  ;;  %p5129_p4 = pnand %p5128_p3, %p5122_p0 }
  0x2a   :  { %4959 = vmatprep.subr.bf16.mxu1 %v5145_v3  ;;  %v4984_v20 = vpack.c.bf16 %v735_v17, %v734_v16  ;;  %v736_v23 = vld [vmem:[%s6043_s3 + $0xb0] sm:$0xff]  ;;  %v737_v24 = vld [vmem:[%s6043_s3 + $0xb8] sm:$0xff]  ;;  %v4981_v25 = vpack.c.bf16 %v733_v22, %v732_v21  ;;  %v738_v27 = vld [vmem:[%s6043_s3 + $0xc0] sm:$0xff] }
  0x2b   :  { %4566 = vmatmul.mubr.msk.f32.vlgmr.msra.gmra.mrb[6].mxu0 %vm147_vm1, %v5365_v43  ;;  %v4987_v26 = vpack.c.bf16 %v737_v24, %v736_v23  ;;  %v739_v28 = vld [vmem:[%s6043_s3 + $0xc8] sm:$0xff]  ;;  %v742_v29 = vld [vmem:[%s6043_s3 + $0xe0] sm:$0xff]  ;;  %v740_v33 = vld [vmem:[%s6043_s3 + $0xd0] sm:$0xff] }
  0x2c   :  { %4577 = vmatmul.mubr.msk.f32.vlgmr.msra.gmra.mrb[6].mxu1 %vm147_vm1, %v5365_v43  ;;  %4955 = vmatpush3.bf16.msra.mxu0 %v4954_v56  ;;  %v743_v30 = vld [vmem:[%s6043_s3 + $0xe8] sm:$0xff]  ;;  %v4990_v31 = vpack.c.bf16 %v739_v28, %v738_v27  ;;  %v741_v34 = vld [vmem:[%s6043_s3 + $0xd8] sm:$0xff]  ;;  %v744_v35 = vld [vmem:[%s6043_s3 + $0xf0] sm:$0xff] }
  0x2d   :  { %4961 = vmatpush3.bf16.msra.mxu1 %v4960_v57  ;;  %4956 = vmatprep.subr.bf16.mxu0 %v5145_v3  ;;  %v4996_v32 = vpack.c.bf16 %v743_v30, %v742_v29  ;;  %v745_v36 = vld [vmem:[%s6043_s3 + $0xf8] sm:$0xff]  ;;  %v4993_v37 = vpack.c.bf16 %v741_v34, %v740_v33  ;;  %v1362_v39 = vld [vmem:[%s6045_s5] sm:$0xff]  ;;  %v1363_v40 = vld [vmem:[%s6045_s5 + $0x8] sm:$0xff] }
  0x2e   :  { %4962 = vmatprep.subr.bf16.mxu1 %v5145_v3  ;;  %4587 = vmatprep.mubr.msk.f32.mxu0 %vm5146_vm0, %v5147_v11  ;;  %v4999_v38 = vpack.c.bf16 %v745_v36, %v744_v35  ;;  %v5002_v41 = vpack.c.bf16 %v1363_v40, %v1362_v39  ;;  %v1364_v42 = vld [vmem:[%s6045_s5 + $0x10] sm:$0xff]  ;;  %v1365_v44 = vld [vmem:[%s6045_s5 + $0x18] sm:$0xff]  ;;  %v1366_v46 = vld [vmem:[%s6045_s5 + $0x20] sm:$0xff] }
  0x2f   :  { %4598 = vmatprep.mubr.msk.f32.mxu1 %vm5146_vm0, %v5147_v11  ;;  %v5005_v45 = vpack.c.bf16 %v1365_v44, %v1364_v42  ;;  %v1367_v47 = vld [vmem:[%s6045_s5 + $0x28] sm:$0xff]  ;;  %v1370_v48 = vld [vmem:[%s6045_s5 + $0x40] sm:$0xff]  ;;  %v1368_v52 = vld [vmem:[%s6045_s5 + $0x30] sm:$0xff] }
  0x30   :  { %4958 = vmatpush3.bf16.msra.mxu0 %v4957_v62  ;;  %v5008_v49 = vpack.c.bf16 %v1367_v47, %v1366_v46  ;;  %v1371_v50 = vld [vmem:[%s6045_s5 + $0x48] sm:$0xff]  ;;  %v1369_v53 = vld [vmem:[%s6045_s5 + $0x38] sm:$0xff]  ;;  %v1372_v54 = vld [vmem:[%s6045_s5 + $0x50] sm:$0xff] }
  0x31   :  { %4964 = vmatpush3.bf16.msra.mxu1 %v4963_v63  ;;  %4965 = vmatprep.subr.bf16.mxu0 %v5145_v3  ;;  %v5014_v51 = vpack.c.bf16 %v1371_v50, %v1370_v48  ;;  %v5011_v55 = vpack.c.bf16 %v1369_v53, %v1368_v52  ;;  %v1373_v56 = vld [vmem:[%s6045_s5 + $0x58] sm:$0xff]  ;;  %v1374_v58 = vld [vmem:[%s6045_s5 + $0x60] sm:$0xff]  ;;  %v1375_v59 = vld [vmem:[%s6045_s5 + $0x68] sm:$0xff] }
  0x32   :  { %4971 = vmatprep.subr.bf16.mxu1 %v5145_v3  ;;  %v5017_v57 = vpack.c.bf16 %v1373_v56, %v1372_v54  ;;  %v1378_v60 = vld [vmem:[%s6045_s5 + $0x80] sm:$0xff]  ;;  %v5020_v61 = vpack.c.bf16 %v1375_v59, %v1374_v58  ;;  %v1379_v62 = vld [vmem:[%s6045_s5 + $0x88] sm:$0xff]  ;;  %v1376_v0 = vld [vmem:[%s6045_s5 + $0x70] sm:$0xff] }
  0x33   :  { %4588 = vmatmul.mubr.msk.f32.vlgmr.msra.gmra.mrb[8].mxu0 %vm147_vm1, %v5288_v18  ;;  %v5026_v63 = vpack.c.bf16 %v1379_v62, %v1378_v60  ;;  %v1377_v1 = vld [vmem:[%s6045_s5 + $0x78] sm:$0xff]  ;;  %v1380_v2 = vld [vmem:[%s6045_s5 + $0x90] sm:$0xff]  ;;  %v1382_v7 = vld [vmem:[%s6045_s5 + $0xa0] sm:$0xff] }
  0x34   :  { %4599 = vmatmul.mubr.msk.f32.vlgmr.msra.gmra.mrb[8].mxu1 %vm147_vm1, %v5288_v18  ;;  %4967 = vmatpush3.bf16.msra.mxu0 %v4966_v5  ;;  %v5023_v4 = vpack.c.bf16 %v1377_v1, %v1376_v0  ;;  %v1381_v5 = vld [vmem:[%s6045_s5 + $0x98] sm:$0xff]  ;;  %v1383_v8 = vld [vmem:[%s6045_s5 + $0xa8] sm:$0xff]  ;;  %v1386_v9 = vld [vmem:[%s6045_s5 + $0xc0] sm:$0xff] }
  0x35   :  { %4973 = vmatpush3.bf16.msra.mxu1 %v4972_v6  ;;  %4968 = vmatprep.subr.bf16.mxu0 %v5145_v3  ;;  %v5029_v6 = vpack.c.bf16 %v1381_v5, %v1380_v2  ;;  %v5032_v10 = vpack.c.bf16 %v1383_v8, %v1382_v7  ;;  %v1384_v14 = vld [vmem:[%s6045_s5 + $0xb0] sm:$0xff]  ;;  %v1385_v15 = vld [vmem:[%s6045_s5 + $0xb8] sm:$0xff]  ;;  %v1391_v21 = vld [vmem:[%s6045_s5 + $0xe8] sm:$0xff] }
  0x36   :  { %4974 = vmatprep.subr.bf16.mxu1 %v5145_v3  ;;  %4609 = vmatprep.mubr.msk.f32.mxu0 %vm5146_vm0, %v5147_v11  ;;  %v1388_v16 = vld [vmem:[%s6045_s5 + $0xd0] sm:$0xff]  ;;  %v1389_v17 = vld [vmem:[%s6045_s5 + $0xd8] sm:$0xff]  ;;  %v4232_v40 = vld [vmem:[%s6044_s4] ss:$0 sm:$0xff] }
  0x37   :  { %4620 = vmatprep.mubr.msk.f32.mxu1 %vm5146_vm0, %v5147_v11  ;;  %v1392_v23 = vld [vmem:[%s6045_s5 + $0xf0] sm:$0xff]  ;;  %v1393_v24 = vld [vmem:[%s6045_s5 + $0xf8] sm:$0xff]  ;;  %v4233_v42 = vld [vmem:[%s6044_s4 + $0x1] ss:$0 sm:$0xff] }
  0x38   :  { %4970 = vmatpush3.bf16.msra.mxu0 %v4969_v12  ;;  %v1387_v12 = vld [vmem:[%s6045_s5 + $0xc8] sm:$0xff]  ;;  %v4216_v44 = vld [vmem:[%s6042_s2] ss:$0 sm:$0xff]  ;;  %v4234_v52 = vld [vmem:[%s6044_s4 + $0x2] ss:$0 sm:$0xff] }
  0x39   :  { %4976 = vmatpush3.bf16.msra.mxu1 %v4975_v13  ;;  %4977 = vmatprep.subr.bf16.mxu0 %v5145_v3  ;;  %v5038_v13 = vpack.c.bf16 %v1387_v12, %v1386_v9  ;;  %v4235_v53 = vld [vmem:[%s6044_s4 + $0x3] ss:$0 sm:$0xff]  ;;  %v4218_v56 = vld [vmem:[%s6042_s2 + $0x2] ss:$0 sm:$0xff]  ;;  %v4236_v1 = vld [vmem:[%s6044_s4 + $0x4] ss:$0 sm:$0xff] }
  0x3a   :  { %4983 = vmatprep.subr.bf16.mxu1 %v5145_v3  ;;  %v4219_v60 = vld [vmem:[%s6042_s2 + $0x3] ss:$0 sm:$0xff]  ;;  %v4237_v2 = vld [vmem:[%s6044_s4 + $0x5] ss:$0 sm:$0xff]  ;;  %v4220_v5 = vld [vmem:[%s6042_s2 + $0x4] ss:$0 sm:$0xff] }
  0x3b   :  { %4610 = vmatmul.mubr.msk.f32.vlgmr.msra.gmra.mrb[10].mxu0 %vm147_vm1, %v5288_v18  ;;  %v4221_v9 = vld [vmem:[%s6042_s2 + $0x5] ss:$0 sm:$0xff] }
  0x3c   :  { %4621 = vmatmul.mubr.msk.f32.vlgmr.msra.gmra.mrb[10].mxu1 %vm147_vm1, %v5288_v18  ;;  %4979 = vmatpush3.bf16.msra.mxu0 %v4978_v19  ;;  %v5041_v19 = vpack.c.bf16 %v1389_v17, %v1388_v16  ;;  %v4239_v16 = vld [vmem:[%s6044_s4 + $0x7] ss:$0 sm:$0xff]  ;;  %v4222_v17 = vld [vmem:[%s6042_s2 + $0x6] ss:$0 sm:$0xff] }
  0x3d   :  { %4985 = vmatpush3.bf16.msra.mxu1 %v4984_v20  ;;  %4980 = vmatprep.subr.bf16.mxu0 %v5145_v3  ;;  %v1390_v20 = vld [vmem:[%s6045_s5 + $0xe0] sm:$0xff] }
  0x3e   :  { %4986 = vmatprep.subr.bf16.mxu1 %v5145_v3  ;;  %4631 = vmatprep.mubr.msk.f32.mxu0 %vm5146_vm0, %v5147_v11  ;;  %v5044_v22 = vpack.c.bf16 %v1391_v21, %v1390_v20 }
  0x3f   :  { %4642 = vmatprep.mubr.msk.f32.mxu1 %vm5146_vm0, %v5147_v11 }
  0x40   :  { %4982 = vmatpush3.bf16.msra.mxu0 %v4981_v25  ;;  %v5047_v25 = vpack.c.bf16 %v1393_v24, %v1392_v23 }
  0x41   :  { %4988 = vmatpush3.bf16.msra.mxu1 %v4987_v26  ;;  %4989 = vmatprep.subr.bf16.mxu0 %v5145_v3 }
  0x42   :  { %4995 = vmatprep.subr.bf16.mxu1 %v5145_v3 }
  0x43   :  { %4632 = vmatmul.mubr.msk.f32.vlgmr.msra.gmra.mrb[12].mxu0 %vm147_vm1, %v5365_v43 }
  0x44   :  { %4643 = vmatmul.mubr.msk.f32.vlgmr.msra.gmra.mrb[12].mxu1 %vm147_vm1, %v5365_v43  ;;  %4991 = vmatpush3.bf16.msra.mxu0 %v4990_v31 }
  0x45   :  { %4997 = vmatpush3.bf16.msra.mxu1 %v4996_v32  ;;  %4992 = vmatprep.subr.bf16.mxu0 %v5145_v3 }
  0x46   :  { %4998 = vmatprep.subr.bf16.mxu1 %v5145_v3  ;;  %4653 = vmatprep.mubr.msk.f32.mxu0 %vm5146_vm0, %v5147_v11 }
  0x47   :  { %4664 = vmatprep.mubr.msk.f32.mxu1 %vm5146_vm0, %v5147_v11 }
  0x48   :  { %4994 = vmatpush3.bf16.msra.mxu0 %v4993_v37 }
  0x49   :  { %5000 = vmatpush3.bf16.msra.mxu1 %v4999_v38  ;;  %5001 = vmatprep.subr.bf16.mxu0 %v5145_v3 }
  0x4a   :  { %5007 = vmatprep.subr.bf16.mxu1 %v5145_v3 }
  0x4b   :  { %4654 = vmatmul.mubr.msk.f32.vlgmr.msra.gmra.mrb[14].mxu0 %vm147_vm1, %v5365_v43 }
  0x4c   :  { %4665 = vmatmul.mubr.msk.f32.vlgmr.msra.gmra.mrb[14].mxu1 %vm147_vm1, %v5365_v43  ;;  %5003 = vmatpush3.bf16.msra.mxu0 %v5002_v41 }
  0x4d   :  { %5004 = vmatprep.subr.bf16.mxu0 %v5145_v3  ;;  %4675 = vmatprep.mubr.msk.f32.mxu0 %vm5146_vm0, %v5147_v11 }
  0x4e   :  { %4686 = vmatprep.mubr.msk.f32.mxu1 %vm5146_vm0, %v5147_v11  ;;  %5009 = vmatpush3.bf16.msra.mxu1 %v5008_v49 }
  0x4f   :  { %5010 = vmatprep.subr.bf16.mxu1 %v5145_v3 }
  0x50   :  { %5006 = vmatpush3.bf16.msra.mxu0 %v5005_v45 }
  0x51   :  { %5013 = vmatprep.subr.bf16.mxu0 %v5145_v3 }
  0x52   :  { %5012 = vmatpush3.bf16.msra.mxu1 %v5011_v55 }
  0x53   :  { %4676 = vmatmul.mubr.msk.f32.vlgmr.msra.gmra.mrb[16].mxu0 %vm147_vm1, %v5288_v18  ;;  %5019 = vmatprep.subr.bf16.mxu1 %v5145_v3 }
  0x54   :  { %5015 = vmatpush3.bf16.msra.mxu0 %v5014_v51  ;;  %4697 = vmatprep.mubr.msk.f32.mxu0 %vm5146_vm0, %v5147_v11  ;;  %v4217_v51 = vld [vmem:[%s6042_s2 + $0x1] ss:$0 sm:$0xff] }
  0x55   :  { %5016 = vmatprep.subr.bf16.mxu0 %v5145_v3  ;;  %4687 = vmatmul.mubr.msk.f32.vlgmr.msra.gmra.mrb[16].mxu1 %vm147_vm1, %v5288_v18 }
  0x56   :  { %5021 = vmatpush3.bf16.msra.mxu1 %v5020_v61  ;;  %4708 = vmatprep.mubr.msk.f32.mxu1 %vm5146_vm0, %v5147_v11 }
  0x57   :  { %5022 = vmatprep.subr.bf16.mxu1 %v5145_v3 }
  0x58   :  { %5018 = vmatpush3.bf16.msra.mxu0 %v5017_v57 }
  0x59   :  { %5025 = vmatprep.subr.bf16.mxu0 %v5145_v3 }
  0x5a   :  { %5024 = vmatpush3.bf16.msra.mxu1 %v5023_v4 }
  0x5b   :  { %4698 = vmatmul.mubr.msk.f32.vlgmr.msra.gmra.mrb[18].mxu0 %vm147_vm1, %v5288_v18  ;;  %5031 = vmatprep.subr.bf16.mxu1 %v5145_v3 }
  0x5c   :  { %5027 = vmatpush3.bf16.msra.mxu0 %v5026_v63  ;;  %4719 = vmatprep.mubr.msk.f32.mxu0 %vm5146_vm0, %v5147_v11 }
  0x5d   :  { %5028 = vmatprep.subr.bf16.mxu0 %v5145_v3  ;;  %4709 = vmatmul.mubr.msk.f32.vlgmr.msra.gmra.mrb[18].mxu1 %vm147_vm1, %v5288_v18  ;;  %v5035_v18 = vpack.c.bf16 %v1385_v15, %v1384_v14  ;;  %v4238_v15 = vld [vmem:[%s6044_s4 + $0x6] ss:$0 sm:$0xff] }
  0x5e   :  { %5033 = vmatpush3.bf16.msra.mxu1 %v5032_v10  ;;  %4730 = vmatprep.mubr.msk.f32.mxu1 %vm5146_vm0, %v5147_v11 }
  0x5f   :  { %5034 = vmatprep.subr.bf16.mxu1 %v5145_v3 }
  0x60   :  { %5030 = vmatpush3.bf16.msra.mxu0 %v5029_v6 }
  0x61   :  { %5037 = vmatprep.subr.bf16.mxu0 %v5145_v3 }
  0x62   :  { %5036 = vmatpush3.bf16.msra.mxu1 %v5035_v18 }
  0x63   :  { %4720 = vmatmul.mubr.msk.f32.vlgmr.msra.gmra.mrb[20].mxu0 %vm147_vm1, %v5365_v43  ;;  %5043 = vmatprep.subr.bf16.mxu1 %v5145_v3 }
  0x64   :  { %5039 = vmatpush3.bf16.msra.mxu0 %v5038_v13  ;;  %4741 = vmatprep.mubr.msk.f32.mxu0 %vm5146_vm0, %v5147_v11 }
  0x65   :  { %5040 = vmatprep.subr.bf16.mxu0 %v5145_v3  ;;  %4731 = vmatmul.mubr.msk.f32.vlgmr.msra.gmra.mrb[20].mxu1 %vm147_vm1, %v5365_v43 }
  0x66   :  { %5045 = vmatpush3.bf16.msra.mxu1 %v5044_v22  ;;  %4752 = vmatprep.mubr.msk.f32.mxu1 %vm5146_vm0, %v5147_v11  ;;  %v4223_v22 = vld [vmem:[%s6042_s2 + $0x7] ss:$0 sm:$0xff] }
  0x67   :  { %5046 = vmatprep.subr.bf16.mxu1 %v5145_v3 }
  0x68   :  { %5042 = vmatpush3.bf16.msra.mxu0 %v5041_v19 }
  0x69   :  { %4755 = vmatprep.subr.mxu0 %v5147_v11 }
  0x6a   :  { %5048 = vmatpush3.bf16.msra.mxu1 %v5047_v25 }
  0x6b   :  { %4742 = vmatmul.mubr.msk.f32.vlgmr.msra.gmra.mrb[22].mxu0 %vm147_vm1, %v5365_v43  ;;  %4770 = vmatprep.subr.mxu1 %v5147_v11 }
  0x6c   :  { %4757 = vmatprep.mubr.msk.f32.mxu0 %vm5146_vm0, %v5147_v11 }
  0x6d   :  { %4753 = vmatmul.mubr.msk.f32.vlgmr.msra.gmra.mrb[22].mxu1 %vm147_vm1, %v5365_v43 }
  0x6e   :  { %4772 = vmatprep.mubr.msk.f32.mxu1 %vm5146_vm0, %v5147_v11 }
  0xe6   :  { %v217_v3 = vpop.f32.mrb[0].mxu0 }
  0xe7   :  { %v4501_v26 = vpop.f32.mrb[1].mxu0  ;;  %v287_v27 = vpop.f32.mrb[0].mxu1  ;;  %v218_v50 = vadd.f32 %v4216_v44, %v217_v3 }
  0xe8   :  { %v4512_v28 = vpop.f32.mrb[1].mxu1  ;;  %v288_v54 = vadd.f32 %v4217_v51, %v287_v27  ;;  %v4248_v26 = vld [vmem:[%s6046_s6] ss:$0 sm:$0xff] }
  0xee   :  { %v357_v29 = vpop.f32.mrb[2].mxu0 }
  0xef   :  { %v4523_v30 = vpop.f32.mrb[3].mxu0  ;;  %v427_v31 = vpop.f32.mrb[2].mxu1  ;;  %v358_v63 = vadd.f32 %v4218_v56, %v357_v29 }
  0xf0   :  { %v4534_v32 = vpop.f32.mrb[3].mxu1  ;;  %v428_v0 = vadd.f32 %v4219_v60, %v427_v31  ;;  %v4249_v30 = vld [vmem:[%s6046_s6 + $0x1] ss:$0 sm:$0xff] }
  0xf6   :  { %v500_v33 = vpop.f32.mrb[4].mxu0 }
  0xf7   :  { %v4545_v34 = vpop.f32.mrb[5].mxu0  ;;  %v570_v35 = vpop.f32.mrb[4].mxu1  ;;  %v501_v13 = vadd.f32 %v4220_v5, %v500_v33 }
  0xf8   :  { %v4556_v36 = vpop.f32.mrb[5].mxu1  ;;  %v571_v14 = vadd.f32 %v4221_v9, %v570_v35 }
  0xfe   :  { %v5689_v37 = vpop.f32.mrb[6].mxu0 }
  0xff   :  { %v4567_v38 = vpop.f32.mrb[7].mxu0  ;;  %v5691_v39 = vpop.f32.mrb[6].mxu1  ;;  %v641_v25 = vadd.f32 %v4222_v17, %v5689_v37 }
 0x100   :  { %v4578_v43 = vpop.f32.mrb[7].mxu1  ;;  %v711_v3 = vadd.f32 %v4223_v22, %v5691_v39 }
 0x106   :  { %v868_v41 = vpop.f32.mrb[8].mxu0 }
 0x107   :  { %v869_v45 = vadd.f32 %v4232_v40, %v868_v41  ;;  %v4589_v46 = vpop.f32.mrb[9].mxu0  ;;  %v938_v47 = vpop.f32.mrb[8].mxu1 }
 0x108   :  { %v4600_v48 = vpop.f32.mrb[9].mxu1  ;;  %v939_v49 = vadd.f32 %v4233_v42, %v938_v47 }
 0x109   :  { %4756 = vmatpush3.xpose.msk.msra.mxu0 %vm2010_vm2, %v869_v45 }
 0x10a   :  { %4760 = vmatprep.subr.mxu0 %v5147_v11 }
 0x10c   :  { %4758 = vmatmul.mubr.msk.f32.vlgmr.msra.gmra.mrb[24].mxu0 %vm2010_vm2, %v218_v50 }
 0x10d   :  { %4761 = vmatpush3.xpose.msk.msra.mxu0 %vm2010_vm2, %v939_v49  ;;  %4762 = vmatprep.mubr.msk.f32.mxu0 %vm5146_vm0, %v5147_v11 }
 0x10e   :  { %v1008_v55 = vpop.f32.mrb[10].mxu0  ;;  %4765 = vmatprep.subr.mxu0 %v5147_v11 }
 0x10f   :  { %v1009_v57 = vadd.f32 %v4234_v52, %v1008_v55  ;;  %v1078_v58 = vpop.f32.mrb[10].mxu1  ;;  %v4611_v59 = vpop.f32.mrb[11].mxu0 }
 0x110   :  { %v1079_v61 = vadd.f32 %v4235_v53, %v1078_v58  ;;  %4763 = vmatmul.mubr.msk.f32.vlgmr.msra.gmra.mrb[26].mxu0 %vm2010_vm2, %v288_v54  ;;  %v4622_v62 = vpop.f32.mrb[11].mxu1 }
 0x111   :  { %4766 = vmatpush3.xpose.msk.msra.mxu0 %vm2010_vm2, %v1009_v57  ;;  %4767 = vmatprep.mubr.msk.f32.mxu0 %vm5146_vm0, %v5147_v11 }
 0x112   :  { %4771 = vmatpush3.xpose.msk.msra.mxu1 %vm2010_vm2, %v1079_v61  ;;  %4775 = vmatprep.subr.mxu0 %v5147_v11 }
 0x113   :  { %4780 = vmatprep.subr.mxu1 %v5147_v11 }
 0x114   :  { %4768 = vmatmul.mubr.msk.f32.vlgmr.msra.gmra.mrb[28].mxu0 %vm2010_vm2, %v358_v63 }
 0x115   :  { %4773 = vmatmul.mubr.msk.f32.vlgmr.msra.gmra.mrb[24].mxu1 %vm2010_vm2, %v428_v0  ;;  %4777 = vmatprep.mubr.msk.f32.mxu0 %vm5146_vm0, %v5147_v11 }
 0x116   :  { %v1148_v4 = vpop.f32.mrb[12].mxu0  ;;  %4782 = vmatprep.mubr.msk.f32.mxu1 %vm5146_vm0, %v5147_v11 }
 0x117   :  { %v1149_v6 = vadd.f32 %v4236_v1, %v1148_v4  ;;  %v1218_v7 = vpop.f32.mrb[12].mxu1  ;;  %v4633_v8 = vpop.f32.mrb[13].mxu0 }
 0x118   :  { %v1219_v10 = vadd.f32 %v4237_v2, %v1218_v7  ;;  %v4644_v12 = vpop.f32.mrb[13].mxu1 }
 0x119   :  { %4776 = vmatpush3.xpose.msk.msra.mxu0 %vm2010_vm2, %v1149_v6 }
 0x11a   :  { %4781 = vmatpush3.xpose.msk.msra.mxu1 %vm2010_vm2, %v1219_v10  ;;  %4785 = vmatprep.subr.mxu0 %v5147_v11 }
 0x11b   :  { %4790 = vmatprep.subr.mxu1 %v5147_v11 }
 0x11c   :  { %4778 = vmatmul.mubr.msk.f32.vlgmr.msra.gmra.mrb[30].mxu0 %vm2010_vm2, %v501_v13 }
 0x11d   :  { %4783 = vmatmul.mubr.msk.f32.vlgmr.msra.gmra.mrb[26].mxu1 %vm2010_vm2, %v571_v14  ;;  %4787 = vmatprep.mubr.msk.f32.mxu0 %vm5146_vm0, %v5147_v11 }
 0x11e   :  { %v1288_v18 = vpop.f32.mrb[14].mxu0  ;;  %4792 = vmatprep.mubr.msk.f32.mxu1 %vm5146_vm0, %v5147_v11 }
 0x11f   :  { %v1289_v19 = vadd.f32 %v4238_v15, %v1288_v18  ;;  %v1358_v20 = vpop.f32.mrb[14].mxu1  ;;  %v4655_v21 = vpop.f32.mrb[15].mxu0 }
 0x120   :  { %v1359_v23 = vadd.f32 %v4239_v16, %v1358_v20  ;;  %v4666_v24 = vpop.f32.mrb[15].mxu1 }
 0x121   :  { %4786 = vmatpush3.xpose.msk.msra.mxu0 %vm2010_vm2, %v1289_v19 }
 0x122   :  { %4791 = vmatpush3.xpose.msk.msra.mxu1 %vm2010_vm2, %v1359_v23  ;;  %4795 = vmatprep.subr.mxu0 %v5147_v11 }
 0x123   :  { %4800 = vmatprep.subr.mxu1 %v5147_v11 }
 0x124   :  { %4788 = vmatmul.mubr.msk.f32.vlgmr.msra.gmra.mrb[32].mxu0 %vm2010_vm2, %v641_v25 }
 0x125   :  { %4793 = vmatmul.mubr.msk.f32.vlgmr.msra.gmra.mrb[28].mxu1 %vm2010_vm2, %v711_v3  ;;  %4797 = vmatprep.mubr.msk.f32.mxu0 %vm5146_vm0, %v5147_v11 }
 0x126   :  { %4802 = vmatprep.mubr.msk.f32.mxu1 %vm5146_vm0, %v5147_v11  ;;  %v1516_v27 = vpop.f32.mrb[16].mxu0 }
 0x127   :  { %v1517_v28 = vadd.f32 %v4248_v26, %v1516_v27  ;;  %v4677_v29 = vpop.f32.mrb[17].mxu0 }
 0x128   :  { %v1586_v31 = vpop.f32.mrb[16].mxu1 }
 0x129   :  { %4796 = vmatpush3.msra.mxu0 %v1517_v28  ;;  %v1587_v33 = vadd.f32 %v4249_v30, %v1586_v31  ;;  %v4688_v34 = vpop.f32.mrb[17].mxu1 }
 0x12a   :  { %4805 = vmatprep.subr.mxu0 %v5147_v11 }
 0x12b   :  { %4801 = vmatpush3.msra.mxu1 %v1587_v33 }
 0x12c   :  { %4810 = vmatprep.subr.mxu1 %v5147_v11 }
 0x12e   :  { %v5790_v32 = vpop.f32.mrb[18].mxu0 }
 0x12f   :  { %v4699_v35 = vpop.f32.mrb[19].mxu0 }
 0x130   :  { %v5793_v36 = vpop.f32.mrb[18].mxu1 }
 0x131   :  { %v4710_v38 = vpop.f32.mrb[19].mxu1 }
 0x136   :  { %v5795_v37 = vpop.f32.mrb[20].mxu0 }
 0x137   :  { %v4721_v39 = vpop.f32.mrb[21].mxu0 }
 0x138   :  { %v5799_v41 = vpop.f32.mrb[20].mxu1 }
 0x139   :  { %v4732_v42 = vpop.f32.mrb[21].mxu1 }
 0x13e   :  { %v5797_v43 = vpop.f32.mrb[22].mxu0 }
 0x13f   :  { %v4743_v40 = vpop.f32.mrb[23].mxu0 }
 0x140   :  { %v5801_v44 = vpop.f32.mrb[22].mxu1 }
 0x141   :  { %v4754_v45 = vpop.f32.mrb[23].mxu1 }
 0x1df   :  { %v2083_v46 = vpop.f32.mrb[24].mxu0 }
 0x1e0   :  { %v4759_v47 = vpop.f32.mrb[25].mxu0  ;;  %v2619_v48 = vsel %vm2010_vm2, %v2083_v46, -inf }
 0x1e1   :  { %2620 = vmax.xlane.f32.xlu0 %v2619_v48 }
 0x1e3   :  { %v2159_v49 = vpop.f32.mrb[26].mxu0 }
 0x1e4   :  { %v4764_v50 = vpop.f32.mrb[27].mxu0  ;;  %v2622_v51 = vsel %vm2010_vm2, %v2159_v49, -inf }
 0x1e5   :  { %2623 = vmax.xlane.f32.xlu0 %v2622_v51 }
 0x1e7   :  { %v2235_v52 = vpop.f32.mrb[28].mxu0 }
 0x1e8   :  { %v2311_v53 = vpop.f32.mrb[24].mxu1  ;;  %v4769_v54 = vpop.f32.mrb[29].mxu0  ;;  %v2625_v55 = vsel %vm2010_vm2, %v2235_v52, -inf }
 0x1e9   :  { %v4774_v56 = vpop.f32.mrb[25].mxu1  ;;  %2626 = vmax.xlane.f32.xlu1 %v2625_v55  ;;  %v2628_v57 = vsel %vm2010_vm2, %v2311_v53, -inf }
 0x1ea   :  { %v4250_v56 = vld [vmem:[%s6046_s6 + $0x2] ss:$0 sm:$0xff] }
 0x1ed   :  { %2629 = vmax.xlane.f32.xlu1 %v2628_v57 }
 0x1ef   :  { %v2387_v58 = vpop.f32.mrb[30].mxu0 }
 0x1f0   :  { %v2463_v59 = vpop.f32.mrb[26].mxu1  ;;  %v4779_v60 = vpop.f32.mrb[31].mxu0  ;;  %v2631_v61 = vsel %vm2010_vm2, %v2387_v58, -inf }
 0x1f1   :  { %v4784_v62 = vpop.f32.mrb[27].mxu1  ;;  %v2634_v63 = vsel %vm2010_vm2, %v2463_v59, -inf  ;;  %2632 = vmax.xlane.f32.xlu0 %v2631_v61  ;;  %v1657_v60 = vadd.f32 %v4250_v56, %v5790_v32  ;;  %v4251_v61 = vld [vmem:[%s6046_s6 + $0x3] ss:$0 sm:$0xff]  ;;  %v4252_v32 = vld [vmem:[%s6046_s6 + $0x4] ss:$0 sm:$0xff] }
 0x1f2   :  { %2635 = vmax.xlane.f32.xlu1 %v2634_v63 }
 0x1f7   :  { %v2539_v0 = vpop.f32.mrb[32].mxu0 }
 0x1f8   :  { %v2615_v1 = vpop.f32.mrb[28].mxu1  ;;  %v4789_v2 = vpop.f32.mrb[33].mxu0  ;;  %v2637_v4 = vsel %vm2010_vm2, %v2539_v0, -inf }
 0x1f9   :  { %v4794_v5 = vpop.f32.mrb[29].mxu1  ;;  %v2640_v6 = vsel %vm2010_vm2, %v2615_v1, -inf  ;;  %2638 = vmax.xlane.f32.xlu0 %v2637_v4 }
 0x1fa   :  { %2641 = vmax.xlane.f32.xlu1 %v2640_v6  ;;  %v1797_v6 = vadd.f32 %v4252_v32, %v5795_v37  ;;  %v4254_v37 = vld [vmem:[%s6046_s6 + $0x6] ss:$0 sm:$0xff] }
 0x26e   :  { %v2621_v7 = vpop.xlane.xlu0 %2620 }
 0x26f   :  { %v2643_v8 = vsub.f32 %v2083_v46, %v2621_v7 }
 0x271   :  { %v2651_v9 = vmul.f32 1.442695, %v2643_v8 }
 0x272   :  { %v2624_v10 = vpop.xlane.xlu0 %2623 }
 0x273   :  { %5079 = vpow2.f32 %v2651_v9  ;;  %v2644_v12 = vsub.f32 %v2159_v49, %v2624_v10 }
 0x275   :  { %v2653_v13 = vmul.f32 1.442695, %v2644_v12 }
 0x276   :  { %v2627_v14 = vpop.xlane.xlu1 %2626 }
 0x277   :  { %5081 = vpow2.f32 %v2653_v13  ;;  %v2645_v15 = vsub.f32 %v2235_v52, %v2627_v14  ;;  %v4255_v14 = vld [vmem:[%s6046_s6 + $0x7] ss:$0 sm:$0xff] }
 0x279   :  { %v2655_v16 = vmul.f32 1.442695, %v2645_v15 }
 0x27a   :  { %v2630_v18 = vpop.xlane.xlu1 %2629 }
 0x27b   :  { %5083 = vpow2.f32 %v2655_v16  ;;  %v2646_v17 = vsub.f32 %v2311_v53, %v2630_v18  ;;  %v1937_v16 = vadd.f32 %v4254_v37, %v5797_v43 }
 0x27d   :  { %v5080_v19 = vpop.eup %5079  ;;  %v2657_v20 = vmul.f32 1.442695, %v2646_v17  ;;  %v2007_v17 = vadd.f32 %v4255_v14, %v5801_v44 }
 0x27e   :  { %v2633_v21 = vpop.xlane.xlu0 %2632  ;;  %v2667_v22 = vsel %vm2010_vm2, %v5080_v19, 0.0 }
 0x27f   :  { %5085 = vpow2.f32 %v2657_v20  ;;  %v2636_v23 = vpop.xlane.xlu1 %2635  ;;  %v2647_v24 = vsub.f32 %v2387_v58, %v2633_v21  ;;  %2668 = vadd.xlane.f32.xlu0 %v2667_v22  ;;  %v3291_v21 = vld [vmem:[%s6047_s7] sm:$0xff]  ;;  %v3292_v22 = vld [vmem:[%s6047_s7 + $0x8] sm:$0xff] }
 0x280   :  { %v2648_v25 = vsub.f32 %v2463_v59, %v2636_v23  ;;  %v3293_v23 = vld [vmem:[%s6047_s7 + $0x10] sm:$0xff] }
 0x281   :  { %v5082_v3 = vpop.eup %5081  ;;  %v2659_v26 = vmul.f32 1.442695, %v2647_v24 }
 0x282   :  { %v2661_v27 = vmul.f32 1.442695, %v2648_v25  ;;  %v2670_v28 = vsel %vm2010_vm2, %v5082_v3, 0.0 }
 0x283   :  { %5087 = vpow2.f32 %v2659_v26  ;;  %2671 = vadd.xlane.f32.xlu1 %v2670_v28  ;;  %v3295_v28 = vld [vmem:[%s6047_s7 + $0x20] sm:$0xff] }
 0x284   :  { %5089 = vpow2.f32 %v2661_v27 }
 0x285   :  { %v5084_v29 = vpop.eup %5083 }
 0x286   :  { %v2639_v30 = vpop.xlane.xlu0 %2638  ;;  %v2673_v31 = vsel %vm2010_vm2, %v5084_v29, 0.0 }
 0x287   :  { %v2642_v33 = vpop.xlane.xlu1 %2641  ;;  %v2649_v34 = vsub.f32 %v2539_v0, %v2639_v30  ;;  %2674 = vadd.xlane.f32.xlu0 %v2673_v31  ;;  %v3296_v31 = vld [vmem:[%s6047_s7 + $0x28] sm:$0xff] }
 0x288   :  { %v2650_v35 = vsub.f32 %v2615_v1, %v2642_v33  ;;  %v1727_v1 = vadd.f32 %v4251_v61, %v5793_v36  ;;  %v4253_v36 = vld [vmem:[%s6046_s6 + $0x5] ss:$0 sm:$0xff] }
 0x289   :  { %v5086_v38 = vpop.eup %5085  ;;  %v2663_v39 = vmul.f32 1.442695, %v2649_v34  ;;  %v1867_v10 = vadd.f32 %v4253_v36, %v5799_v41 }
 0x28a   :  { %v2665_v40 = vmul.f32 1.442695, %v2650_v35  ;;  %v2676_v42 = vsel %vm2010_vm2, %v5086_v38, 0.0  ;;  %v3297_v35 = vld [vmem:[%s6047_s7 + $0x30] sm:$0xff] }
 0x28b   :  { %5091 = vpow2.f32 %v2663_v39  ;;  %2677 = vadd.xlane.f32.xlu1 %v2676_v42  ;;  %v3298_v39 = vld [vmem:[%s6047_s7 + $0x38] sm:$0xff] }
 0x28c   :  { %5093 = vpow2.f32 %v2665_v40 }
 0x28d   :  { %v5815_v45 = vpop.eup %5087 }
 0x28e   :  { %v5817_v46 = vpop.eup %5089  ;;  %v2679_v47 = vsel %vm2010_vm2, %v5815_v45, 0.0 }
 0x28f   :  { %v2682_v48 = vsel %vm2010_vm2, %v5817_v46, 0.0  ;;  %2680 = vadd.xlane.f32.xlu0 %v2679_v47 }
 0x290   :  { %2683 = vadd.xlane.f32.xlu1 %v2682_v48 }
 0x295   :  { %v5823_v49 = vpop.eup %5091 }
 0x296   :  { %v5825_v50 = vpop.eup %5093  ;;  %v2685_v51 = vsel %vm2010_vm2, %v5823_v49, 0.0 }
 0x297   :  { %v2688_v52 = vsel %vm2010_vm2, %v5825_v50, 0.0  ;;  %2686 = vadd.xlane.f32.xlu0 %v2685_v51 }
 0x298   :  { %2689 = vadd.xlane.f32.xlu1 %v2688_v52 }
 0x30c   :  { %v2669_v53 = vpop.xlane.xlu0 %2668 }
 0x30d   :  { %5095 = vrcp.f32 %v2669_v53 }
 0x310   :  { %v2672_v54 = vpop.xlane.xlu1 %2671 }
 0x311   :  { %5097 = vrcp.f32 %v2672_v54 }
 0x314   :  { %v2675_v55 = vpop.xlane.xlu0 %2674 }
 0x315   :  { %5099 = vrcp.f32 %v2675_v55 }
 0x317   :  { %v5096_v57 = vpop.eup %5095 }
 0x318   :  { %v2699_v58 = vmul.f32 %v5096_v57, %v5080_v19  ;;  %v2678_v59 = vpop.xlane.xlu1 %2677 }
 0x319   :  { %5101 = vrcp.f32 %v2678_v59 }
 0x31a   :  { %4798 = vmatmul.mubr.msk.f32.vlgmr.msra.gmra.mrb[34].mxu0 %vm2010_vm2, %v2699_v58 }
 0x31b   :  { %v5098_v62 = vpop.eup %5097  ;;  %4806 = vmatpush3.msra.mxu0 %v1657_v60  ;;  %4807 = vmatprep.mubr.msk.f32.mxu0 %vm5146_vm0, %v5147_v11 }
 0x31c   :  { %v2700_v63 = vmul.f32 %v5098_v62, %v5082_v3  ;;  %v2681_v0 = vpop.xlane.xlu0 %2680  ;;  %4815 = vmatprep.subr.mxu0 %v5147_v11  ;;  %v3294_v3 = vld [vmem:[%s6047_s7 + $0x18] sm:$0xff]  ;;  %v4296_v62 = vld [vmem:[%s6048_s8] ss:$0 sm:$0xff] }
 0x31d   :  { %v2684_v2 = vpop.xlane.xlu1 %2683  ;;  %5103 = vrcp.f32 %v2681_v0 }
 0x31e   :  { %5105 = vrcp.f32 %v2684_v2  ;;  %4803 = vmatmul.mubr.msk.f32.vlgmr.msra.gmra.mrb[30].mxu1 %vm2010_vm2, %v2700_v63 }
 0x31f   :  { %v5100_v4 = vpop.eup %5099  ;;  %4811 = vmatpush3.msra.mxu1 %v1727_v1  ;;  %4812 = vmatprep.mubr.msk.f32.mxu1 %vm5146_vm0, %v5147_v11 }
 0x320   :  { %v2701_v5 = vmul.f32 %v5100_v4, %v5084_v29  ;;  %4820 = vmatprep.subr.mxu1 %v5147_v11 }
 0x322   :  { %4808 = vmatmul.mubr.msk.f32.vlgmr.msra.gmra.mrb[36].mxu0 %vm2010_vm2, %v2701_v5 }
 0x323   :  { %v5102_v7 = vpop.eup %5101  ;;  %4816 = vmatpush3.msra.mxu0 %v1797_v6  ;;  %4817 = vmatprep.mubr.msk.f32.mxu0 %vm5146_vm0, %v5147_v11 }
 0x324   :  { %v2702_v8 = vmul.f32 %v5102_v7, %v5086_v38  ;;  %v2687_v9 = vpop.xlane.xlu0 %2686  ;;  %4825 = vmatprep.subr.mxu0 %v5147_v11  ;;  %v5119_v7 = vld [vmem:[%s6063_s22] sm:$0xff] }
 0x325   :  { %v2690_v12 = vpop.xlane.xlu1 %2689  ;;  %5107 = vrcp.f32 %v2687_v9 }
 0x326   :  { %5109 = vrcp.f32 %v2690_v12  ;;  %4813 = vmatmul.mubr.msk.f32.vlgmr.msra.gmra.mrb[32].mxu1 %vm2010_vm2, %v2702_v8 }
 0x327   :  { %v5104_v13 = vpop.eup %5103  ;;  %4821 = vmatpush3.msra.mxu1 %v1867_v10  ;;  %4822 = vmatprep.mubr.msk.f32.mxu1 %vm5146_vm0, %v5147_v11 }
 0x328   :  { %v5106_v15 = vpop.eup %5105  ;;  %v2703_v41 = vmul.f32 %v5104_v13, %v5815_v45  ;;  %4830 = vmatprep.subr.mxu1 %v5147_v11 }
 0x329   :  { %v2704_v18 = vmul.f32 %v5106_v15, %v5817_v46 }
 0x32a   :  { %4818 = vmatmul.mubr.msk.f32.vlgmr.msra.gmra.mrb[38].mxu0 %vm2010_vm2, %v2703_v41 }
 0x32b   :  { %4823 = vmatmul.mubr.msk.f32.vlgmr.msra.gmra.mrb[34].mxu1 %vm2010_vm2, %v2704_v18  ;;  %4826 = vmatpush3.msra.mxu0 %v1937_v16 }
 0x32c   :  { %4831 = vmatpush3.msra.mxu1 %v2007_v17  ;;  %4827 = vmatprep.mubr.msk.f32.mxu0 %vm5146_vm0, %v5147_v11 }
 0x32d   :  { %4832 = vmatprep.mubr.msk.f32.mxu1 %vm5146_vm0, %v5147_v11  ;;  %4835 = vmatprep.subr.mxu0 %v5147_v11 }
 0x32e   :  { %4840 = vmatprep.subr.mxu1 %v5147_v11 }
 0x32f   :  { %v5108_v43 = vpop.eup %5107 }
 0x330   :  { %v5110_v19 = vpop.eup %5109  ;;  %v2705_v44 = vmul.f32 %v5108_v43, %v5823_v49 }
 0x331   :  { %v2706_v20 = vmul.f32 %v5110_v19, %v5825_v50 }
 0x332   :  { %4828 = vmatmul.mubr.msk.f32.vlgmr.msra.gmra.mrb[40].mxu0 %vm2010_vm2, %v2705_v44  ;;  %v5120_v44 = vld [vmem:[%s6063_s22 + $0x8] sm:$0xff] }
 0x333   :  { %4833 = vmatmul.mubr.msk.f32.vlgmr.msra.gmra.mrb[36].mxu1 %vm2010_vm2, %v2706_v20  ;;  %4837 = vmatprep.mubr.msk.f32.mxu0 %vm5146_vm0, %v5147_v11 }
 0x334   :  { %4842 = vmatprep.mubr.msk.f32.mxu1 %vm5146_vm0, %v5147_v11  ;;  %4836 = vmatpush3.msra.mxu0 %v3291_v21 }
 0x335   :  { %4845 = vmatprep.subr.mxu0 %v5147_v11  ;;  %4841 = vmatpush3.msra.mxu1 %v3292_v22 }
 0x336   :  { %4850 = vmatprep.subr.mxu1 %v5147_v11 }
 0x3ed   :  { %v2776_v24 = vpop.f32.mrb[34].mxu0 }
 0x3ee   :  { %v4799_v25 = vpop.f32.mrb[35].mxu0  ;;  %4838 = vmatmul.mubr.msk.f32.vlgmr.msra.gmra.mrb[42].mxu0 %vm2010_vm2, %v2776_v24  ;;  %v3957_v24 = vld [vmem:[%s6049_s9] sm:$0xff] }
 0x3ef   :  { %4846 = vmatpush3.msra.mxu0 %v3293_v23  ;;  %4847 = vmatprep.mubr.msk.f32.mxu0 %vm5146_vm0, %v5147_v11  ;;  %v3958_v25 = vld [vmem:[%s6049_s9 + $0x8] sm:$0xff] }
 0x3f0   :  { %4855 = vmatprep.subr.mxu0 %v5147_v11 }
 0x3f1   :  { %v2849_v26 = vpop.f32.mrb[30].mxu1 }
 0x3f2   :  { %v4804_v27 = vpop.f32.mrb[31].mxu1  ;;  %4843 = vmatmul.mubr.msk.f32.vlgmr.msra.gmra.mrb[38].mxu1 %vm2010_vm2, %v2849_v26  ;;  %v3959_v26 = vld [vmem:[%s6049_s9 + $0x10] sm:$0xff] }
 0x3f3   :  { %4851 = vmatpush3.msra.mxu1 %v3294_v3  ;;  %4852 = vmatprep.mubr.msk.f32.mxu1 %vm5146_vm0, %v5147_v11  ;;  %v5049_v3 = vpack.c.bf16 %v3958_v25, %v3957_v24  ;;  %v3960_v27 = vld [vmem:[%s6049_s9 + $0x18] sm:$0xff] }
 0x3f4   :  { %4860 = vmatprep.subr.mxu1 %v5147_v11 }
 0x3f5   :  { %v2922_v29 = vpop.f32.mrb[36].mxu0 }
 0x3f6   :  { %v4809_v30 = vpop.f32.mrb[37].mxu0  ;;  %4848 = vmatmul.mubr.msk.f32.vlgmr.msra.gmra.mrb[44].mxu0 %vm2010_vm2, %v2922_v29  ;;  %v4051_v29 = vld [vmem:[%s6051_s11] sm:$0xff] }
 0x3f7   :  { %4856 = vmatpush3.msra.mxu0 %v3295_v28  ;;  %4857 = vmatprep.mubr.msk.f32.mxu0 %vm5146_vm0, %v5147_v11  ;;  %v5053_v28 = vpack.c.bf16 %v3960_v27, %v3959_v26  ;;  %v4052_v30 = vld [vmem:[%s6051_s11 + $0x8] sm:$0xff] }
 0x3f8   :  { %4865 = vmatprep.subr.mxu0 %v5147_v11 }
 0x3f9   :  { %v2995_v33 = vpop.f32.mrb[32].mxu1 }
 0x3fa   :  { %v4814_v34 = vpop.f32.mrb[33].mxu1  ;;  %4853 = vmatmul.mubr.msk.f32.vlgmr.msra.gmra.mrb[40].mxu1 %vm2010_vm2, %v2995_v33  ;;  %v5057_v33 = vpack.c.bf16 %v4052_v30, %v4051_v29 }
 0x3fb   :  { %4861 = vmatpush3.msra.mxu1 %v3296_v31  ;;  %4862 = vmatprep.mubr.msk.f32.mxu1 %vm5146_vm0, %v5147_v11  ;;  %v4053_v31 = vld [vmem:[%s6051_s11 + $0x10] sm:$0xff]  ;;  %v4054_v34 = vld [vmem:[%s6051_s11 + $0x18] sm:$0xff] }
 0x3fc   :  { %4870 = vmatprep.subr.mxu1 %v5147_v11 }
 0x3fd   :  { %v3068_v38 = vpop.f32.mrb[38].mxu0 }
 0x3fe   :  { %v3141_v40 = vpop.f32.mrb[34].mxu1  ;;  %v4819_v42 = vpop.f32.mrb[39].mxu0  ;;  %4858 = vmatmul.mubr.msk.f32.vlgmr.msra.gmra.mrb[46].mxu0 %vm2010_vm2, %v3068_v38  ;;  %v4055_v38 = vld [vmem:[%s6051_s11 + $0x20] sm:$0xff] }
 0x3ff   :  { %v4824_v45 = vpop.f32.mrb[35].mxu1  ;;  %4863 = vmatmul.mubr.msk.f32.vlgmr.msra.gmra.mrb[42].mxu1 %vm2010_vm2, %v3141_v40  ;;  %4866 = vmatpush3.msra.mxu0 %v3297_v35  ;;  %v5061_v35 = vpack.c.bf16 %v4054_v34, %v4053_v31 }
 0x400   :  { %4867 = vmatprep.mubr.msk.f32.mxu0 %vm5146_vm0, %v5147_v11  ;;  %4871 = vmatpush3.msra.mxu1 %v3298_v39  ;;  %v4056_v39 = vld [vmem:[%s6051_s11 + $0x28] sm:$0xff] }
 0x401   :  { %4872 = vmatprep.mubr.msk.f32.mxu1 %vm5146_vm0, %v5147_v11  ;;  %5050 = vmatprep.subr.bf16.mxu0 %v5049_v3  ;;  %v5065_v40 = vpack.c.bf16 %v4056_v39, %v4055_v38 }
 0x402   :  { %5058 = vmatprep.subr.bf16.mxu1 %v5057_v33 }
 0x405   :  { %v3214_v46 = vpop.f32.mrb[40].mxu0 }
 0x406   :  { %v3287_v47 = vpop.f32.mrb[36].mxu1  ;;  %v4829_v48 = vpop.f32.mrb[41].mxu0  ;;  %4868 = vmatmul.mubr.msk.f32.vlgmr.msra.gmra.mrb[48].mxu0 %vm2010_vm2, %v3214_v46 }
 0x407   :  { %v4834_v49 = vpop.f32.mrb[37].mxu1  ;;  %4873 = vmatmul.mubr.msk.f32.vlgmr.msra.gmra.mrb[44].mxu1 %vm2010_vm2, %v3287_v47  ;;  %5052 = vmatpush3.bf16.msra.mxu0 %v5049_v3 }
 0x408   :  { %5054 = vmatprep.subr.bf16.mxu0 %v5053_v28  ;;  %5060 = vmatpush3.bf16.msra.mxu1 %v5057_v33 }
 0x409   :  { %5062 = vmatprep.subr.bf16.mxu1 %v5061_v35 }
 0x40b   :  { %5056 = vmatpush3.bf16.msra.mxu0 %v5053_v28 }
 0x40c   :  { %5064 = vmatpush3.bf16.msra.mxu1 %v5061_v35 }
 0x40d   :  { %5066 = vmatprep.subr.bf16.mxu1 %v5065_v40 }
 0x410   :  { %5068 = vmatpush3.bf16.msra.mxu1 %v5065_v40 }
 0x4c1   :  { %v3368_v50 = vpop.f32.mrb[42].mxu0 }
 0x4c2   :  { %v4839_v51 = vpop.f32.mrb[43].mxu0  ;;  %v3883_v53 = vsel %vm147_vm1, %v3368_v50, 0.0 }
 0x4c5   :  { %v3441_v52 = vpop.f32.mrb[38].mxu1 }
 0x4c6   :  { %v3884_v54 = vsel %vm147_vm1, %v3441_v52, 0.0  ;;  %v4844_v55 = vpop.f32.mrb[39].mxu1 }
 0x4c7   :  { %v3885_v56 = vadd.f32 %v3884_v54, %v3883_v53 }
 0x4c9   :  { %v3514_v57 = vpop.f32.mrb[44].mxu0 }
 0x4ca   :  { %v3886_v11 = vsel %vm147_vm1, %v3514_v57, 0.0  ;;  %v4849_v58 = vpop.f32.mrb[45].mxu0 }
 0x4cb   :  { %v3887_v59 = vadd.f32 %v3886_v11, %v3885_v56  ;;  %v4297_v58 = vld [vmem:[%s6053_s13] ss:$0 sm:$0xff] }
 0x4cd   :  { %v3587_v60 = vpop.f32.mrb[40].mxu1 }
 0x4ce   :  { %v3888_v61 = vsel %vm147_vm1, %v3587_v60, 0.0  ;;  %v4854_v63 = vpop.f32.mrb[41].mxu1 }
 0x4cf   :  { %v3889_v0 = vadd.f32 %v3888_v61, %v3887_v59  ;;  %v4298_v61 = vld [vmem:[%s6054_s14] ss:$0 sm:$0xff] }
 0x4d1   :  { %v3904_v1 = vadd.f32 %v4296_v62, %v3889_v0  ;;  %v3660_v2 = vpop.f32.mrb[46].mxu0 }
 0x4d2   :  { %v3890_v32 = vsel %vm147_vm1, %v3660_v2, 0.0  ;;  %v3733_v4 = vpop.f32.mrb[42].mxu1  ;;  %v4859_v5 = vpop.f32.mrb[47].mxu0 }
 0x4d3   :  { %v3891_v6 = vsel %vm147_vm1, %v3733_v4, 0.0  ;;  %v4864_v36 = vpop.f32.mrb[43].mxu1  ;;  %v5951_v8 = vadd.f32 %v5119_v7, %v3904_v1  ;;  %v4057_v5 = vld [vmem:[%s6051_s11 + $0x30] sm:$0xff]  ;;  %v4299_v7 = vld [vmem:[%s6050_s10] ss:$0 sm:$0xff] }
 0x4d4   :  { %v3892_v9 = vadd.f32 %v3891_v6, %v3890_v32  ;;  %v4058_v6 = vld [vmem:[%s6051_s11 + $0x38] sm:$0xff] }
 0x4d5   :  { %v3908_v10 = vsel %vm147_vm1, %v5951_v8, 0.0  ;;  %v3917_v12 = vmul.f32 %v5951_v8, %v5951_v8  ;;  %v5069_v36 = vpack.c.bf16 %v4058_v6, %v4057_v5 }
 0x4d6   :  { %3909 = vadd.xlane.f32.xlu0 %v3908_v10 }
 0x4d7   :  { %v3919_v13 = vsel %vm147_vm1, %v3917_v12, 0.0  ;;  %5070 = vmatprep.subr.bf16.mxu1 %v5069_v36 }
 0x4d8   :  { %5072 = vmatpush3.bf16.msra.mxu1 %v5069_v36 }
 0x4d9   :  { %v3806_v37 = vpop.f32.mrb[48].mxu0 }
 0x4da   :  { %v3893_v14 = vsel %vm147_vm1, %v3806_v37, 0.0  ;;  %v3879_v15 = vpop.f32.mrb[44].mxu1  ;;  %3920 = vadd.xlane.f32.xlu0 %v3919_v13  ;;  %v4869_v41 = vpop.f32.mrb[49].mxu0 }
 0x4db   :  { %v3894_v16 = vadd.f32 %v3893_v14, %v3892_v9  ;;  %v4874_v18 = vpop.f32.mrb[45].mxu1  ;;  %v3895_v17 = vsel %vm147_vm1, %v3879_v15, 0.0  ;;  %v4302_v14 = vld [vmem:[%s6052_s12] ss:$0 sm:$0xff] }
 0x4dd   :  { %v3896_v43 = vadd.f32 %v3895_v17, %v3894_v16 }
 0x4df   :  { %v3905_v19 = vadd.f32 %v4296_v62, %v3896_v43 }
 0x4e1   :  { %v3907_v20 = vadd.f32 %v5120_v44, %v3905_v19 }
 0x4e3   :  { %v3911_v21 = vsel %vm147_vm1, %v3907_v20, 0.0  ;;  %v3918_v22 = vmul.f32 %v3907_v20, %v3907_v20 }
 0x4e4   :  { %3912 = vadd.xlane.f32.xlu1 %v3911_v21 }
 0x4e5   :  { %v3922_v23 = vsel %vm147_vm1, %v3918_v22, 0.0 }
 0x4e8   :  { %3923 = vadd.xlane.f32.xlu1 %v3922_v23 }
 0x563   :  { %v3910_v42 = vpop.xlane.xlu0 %3909 }
 0x564   :  { %v3915_v45 = vmul.f32 0.03125, %v3910_v42 }
 0x566   :  { %v3927_v47 = vmul.f32 %v3915_v45, %v3915_v45  ;;  %v3931_v56 = vsub.f32 %v5951_v8, %v3915_v45 }
 0x567   :  { %v3921_v46 = vpop.xlane.xlu0 %3920 }
 0x568   :  { %v3925_v48 = vmul.f32 0.03125, %v3921_v46  ;;  %v4305_v46 = vld [vmem:[%s6055_s15] ss:$0 sm:$0xff] }
 0x56a   :  { %v3929_v49 = vsub.f32 %v3925_v48, %v3927_v47 }
 0x56c   :  { %v3933_v50 = vadd.f32 1e-05, %v3929_v49 }
 0x56e   :  { %5111 = vrsqrt.f32 %v3933_v50  ;;  %v4306_v50 = vld [vmem:[%s6056_s16] ss:$0 sm:$0xff] }
 0x571   :  { %v3913_v51 = vpop.xlane.xlu1 %3912 }
 0x572   :  { %v3916_v52 = vmul.f32 0.03125, %v3913_v51 }
 0x574   :  { %v3928_v54 = vmul.f32 %v3916_v52, %v3916_v52  ;;  %v3932_v0 = vsub.f32 %v3907_v20, %v3916_v52 }
 0x575   :  { %v3924_v53 = vpop.xlane.xlu1 %3923 }
 0x576   :  { %v3926_v55 = vmul.f32 0.03125, %v3924_v53 }
 0x578   :  { %v5112_v57 = vpop.eup %5111  ;;  %v3930_v11 = vsub.f32 %v3926_v55, %v3928_v54 }
 0x579   :  { %v3937_v59 = vmul.f32 %v5112_v57, %v3931_v56 }
 0x57a   :  { %v3934_v60 = vadd.f32 1e-05, %v3930_v11 }
 0x57b   :  { %v3946_v62 = vmul.f32 %v4297_v58, %v3937_v59 }
 0x57c   :  { %5113 = vrsqrt.f32 %v3934_v60 }
 0x57d   :  { %v3955_v63 = vadd.f32 %v4298_v61, %v3946_v62 }
 0x57f   :  { %4883 = vmatprep.mubr.msk.f32.mxu0 %vm147_vm1, %v3955_v63 }
 0x586   :  { %v5114_v1 = vpop.eup %5113 }
 0x587   :  { %v3938_v2 = vmul.f32 %v5114_v1, %v3932_v0 }
 0x589   :  { %v3947_v32 = vmul.f32 %v4297_v58, %v3938_v2 }
 0x58b   :  { %v3956_v4 = vadd.f32 %v4298_v61, %v3947_v32 }
 0x58d   :  { %4884 = vmatmul.mubr.msk.f32.vlgmr.msra.gmra.mrb[50].mxu0 %vm147_vm1, %v3956_v4 }
 0x660   :  { %v4885_v8 = vpop.f32.mrb[50].mxu0 }
 0x661   :  { %v4046_v9 = vadd.f32 %v4885_v8, %v4299_v7  ;;  %v4040_v10 = vpop.f32.mrb[51].mxu0 }
 0x662   :  { %v4041_v12 = vadd.f32 %v4299_v7, %v4040_v10 }
 0x663   :  { %v4050_v13 = vmax.f32 %v4046_v9, 0.0 }
 0x664   :  { %v4049_v37 = vmax.f32 %v4041_v12, 0.0 }
 0x666   :  { %4902 = vmatprep.mubr.msk.f32.mxu1 %vm4066_vm3, %v4049_v37 }
 0x667   :  { %4903 = vmatmul.mubr.msk.f32.vlgmr.msra.gmra.mrb[46].mxu1 %vm4066_vm3, %v4050_v13 }
 0x73a   :  { %v4904_v15 = vpop.f32.mrb[46].mxu1 }
 0x73b   :  { %v4145_v41 = vadd.f32 %v4904_v15, %v4302_v14  ;;  %v4139_v16 = vpop.f32.mrb[47].mxu1 }
 0x73c   :  { %v4140_v18 = vadd.f32 %v4302_v14, %v4139_v16 }
 0x73d   :  { %v4149_v17 = vadd.f32 %v4145_v41, %v3956_v4 }
 0x73e   :  { %v4148_v43 = vadd.f32 %v4140_v18, %v3955_v63 }
 0x73f   :  { %v4153_v19 = vsel %vm147_vm1, %v4149_v17, 0.0  ;;  %v4159_v44 = vmul.f32 %v4149_v17, %v4149_v17 }
 0x740   :  { %4154 = vadd.xlane.f32.xlu1 %v4153_v19  ;;  %v4150_v20 = vsel %vm147_vm1, %v4148_v43, 0.0  ;;  %v4158_v21 = vmul.f32 %v4148_v43, %v4148_v43 }
 0x741   :  { %4151 = vadd.xlane.f32.xlu0 %v4150_v20  ;;  %v4163_v22 = vsel %vm147_vm1, %v4159_v44, 0.0 }
 0x742   :  { %v4160_v23 = vsel %vm147_vm1, %v4158_v21, 0.0 }
 0x744   :  { %4164 = vadd.xlane.f32.xlu1 %v4163_v22 }
 0x745   :  { %4161 = vadd.xlane.f32.xlu0 %v4160_v23 }
 0x7cd   :  { %v4155_v24 = vpop.xlane.xlu1 %4154 }
 0x7ce   :  { %v4157_v25 = vmul.f32 0.03125, %v4155_v24  ;;  %v4152_v3 = vpop.xlane.xlu0 %4151 }
 0x7cf   :  { %v4156_v26 = vmul.f32 0.03125, %v4152_v3 }
 0x7d0   :  { %v4169_v28 = vmul.f32 %v4157_v25, %v4157_v25  ;;  %v4173_v40 = vsub.f32 %v4149_v17, %v4157_v25 }
 0x7d1   :  { %v4165_v27 = vpop.xlane.xlu1 %4164  ;;  %v4168_v31 = vmul.f32 %v4156_v26, %v4156_v26  ;;  %v4172_v45 = vsub.f32 %v4148_v43, %v4156_v26 }
 0x7d2   :  { %v4167_v29 = vmul.f32 0.03125, %v4165_v27  ;;  %v4162_v30 = vpop.xlane.xlu0 %4161 }
 0x7d3   :  { %v4166_v33 = vmul.f32 0.03125, %v4162_v30 }
 0x7d4   :  { %v4171_v34 = vsub.f32 %v4167_v29, %v4169_v28 }
 0x7d5   :  { %v4170_v35 = vsub.f32 %v4166_v33, %v4168_v31 }
 0x7d6   :  { %v4175_v38 = vadd.f32 1e-05, %v4171_v34 }
 0x7d7   :  { %v4174_v39 = vadd.f32 1e-05, %v4170_v35 }
 0x7d8   :  { %5115 = vrsqrt.f32 %v4175_v38 }
 0x7d9   :  { %5117 = vrsqrt.f32 %v4174_v39 }
 0x7e2   :  { %v5116_v42 = vpop.eup %5115 }
 0x7e3   :  { %v5118_v47 = vpop.eup %5117  ;;  %v4179_v48 = vmul.f32 %v5116_v42, %v4173_v40 }
 0x7e4   :  { %v4178_v49 = vmul.f32 %v5118_v47, %v4172_v45 }
 0x7e5   :  { %v4188_v51 = vmul.f32 %v4305_v46, %v4179_v48 }
 0x7e6   :  { %v4187_v52 = vmul.f32 %v4305_v46, %v4178_v49 }
 0x7e7   :  { %v4197_v53 = vadd.f32 %v4306_v50, %v4188_v51 }
 0x7e8   :  { %v4196_v54 = vadd.f32 %v4306_v50, %v4187_v52 }
 0x7e9   :  { %4199 = vst.msk [vmem:[#allocation2 + $0x8] sm:$0xff] %vm147_vm1, %v4197_v53 }
 0x7ea   :  { %4198 = vst.msk [vmem:[#allocation2] sm:$0xff] %vm147_vm1, %v4196_v54 }
 0x7eb   :  { %5132 = shalt.err (!%p5129_p4)
}
 0x7ec   :  { %s5133_s29 = scalar_lea.hbm %s6057_s17, 256 }
 0x7ed   :  { %p5134_p5 = scmp.ne.s32.totalorder %s6057_s17, %s5133_s29  ;;  %p5137_p6 = scmp.lt.u32.totalorder %s5133_s29, %s6057_s17 }
 0x7ef   :  { %p5139_p7 = pnand %p5137_p6, %p5134_p5 }
 0x7f1   :  { %5142 = shalt.err (!%p5139_p7)
}
 0x7f2   :  { %s5149_s9 = smov 128   ;;  %s5150_s7 = smov 8  }
 0x7f3   :  { %4211 = dma.vmem_to_hbm [thread:$0]  %s4206_s27, 256, %s6057_s17, [#allocation3], %s5149_s9, %s5149_s9, %s5150_s7  }
 0x7f4   :  { %5143 = dma.done.wait [#allocation3], 256  }
 0x7f5   :  { %5144 = vsyncadd [#allocation3], 4294967040 }
 0x7f6   :  { %4215 = vsyncpa [#allocation3], 1 }

</bundles_post_ra>
